<compile_context>
chip_gen: v7x
topology: tpu7x:2x2x1
jax: 0.10.0
libtpu: 0.0.40
codegen_flags: <defaults>
</compile_context>

<pallas_src>
import functools
import math

import jax
import jax.numpy as jnp
from jax.experimental import pallas as pl
from jax.experimental.pallas import tpu as pltpu


MXU_DTYPE = jnp.bfloat16   # matmul-operand dtype (f32 accumulation everywhere)
LN_EPS = 1e-5


def _layernorm(y, g, b):
    """Fused one-pass LayerNorm: var = E[y^2] - mean^2 (two independent reductions)."""
    inv_e = 1.0 / y.shape[-1]
    s1 = jnp.sum(y, axis=-1, keepdims=True)
    s2 = jnp.sum(y * y, axis=-1, keepdims=True)
    mean = s1 * inv_e
    var = jnp.maximum(s2 * inv_e - mean * mean, 0.0)
    return (y - mean) * jax.lax.rsqrt(var + LN_EPS) * g + b


def _encoder_kernel(x_ref, wqkv_ref, bqkv_ref, wo_ref, bo_ref,
                    w1_ref, b1_ref, w2_ref, b2_ref,
                    ln1g_ref, ln1b_ref, ln2g_ref, ln2b_ref,
                    fcw_ref, fcb_ref,
                    future_ref, outx_ref,
                    *, num_heads, batch):
    """One fused post-norm TransformerEncoderLayer per grid step (grid=(num_layers,)).

    The running activation (N, E) is carried in outx_ref (constant-index output block,
    VMEM-resident across the whole grid); fc_out is applied on the last step.
    """
    l = pl.program_id(0)
    n_layers = pl.num_programs(0)

    N, E = outx_ref.shape
    H = num_heads
    Dh = E // H
    B = batch

    @pl.when(l == 0)
    def _():
        outx_ref[...] = x_ref[...].astype(outx_ref.dtype)

    x = outx_ref[...]                                   # (N, E) f32 running activation
    xb = x.astype(MXU_DTYPE)

    # ---- self-attention: fused qkv projection (1/sqrt(Dh) folded into the q columns) ----
    qkv = jnp.dot(xb, wqkv_ref[...], preferred_element_type=jnp.float32) + bqkv_ref[...]
    q = qkv[:, :E].astype(MXU_DTYPE)                    # lane-aligned slice (0:128)
    kT = qkv[:, E:2 * E].T.astype(MXU_DTYPE)            # (E, N): ONE transpose per layer
    v = qkv[:, 2 * E:].astype(MXU_DTYPE)                # lane-aligned slice

    # Batch mask over the seq-major flattened rows: row n belongs to batch n % B, so rows
    # i and j may attend iff i % B == j % B.  Computed once per layer (cheap VPU work).
    if B > 1:
        rb = jax.lax.broadcasted_iota(jnp.int32, (N, N), 0) % B
        cb = jax.lax.broadcasted_iota(jnp.int32, (N, N), 1) % B
        batch_mask = rb == cb

    # Per-head loop (H is small and static; batch dim handled by the mask above).
    head_outs = []
    for h in range(H):
        c0 = h * Dh
        s = jnp.dot(q[:, c0:c0 + Dh], kT[c0:c0 + Dh, :],
                    preferred_element_type=jnp.float32)               # (N, N)
        if B > 1:
            s = jnp.where(batch_mask, s, jnp.float32(-1e30))
        s = s - jnp.max(s, axis=-1, keepdims=True)
        p = jnp.exp(s)
        p = p / jnp.sum(p, axis=-1, keepdims=True)                    # exact softmax
        head_outs.append(jnp.dot(p.astype(MXU_DTYPE), v[:, c0:c0 + Dh],
                                 preferred_element_type=jnp.float32)) # (N, Dh)

    # Head recombine: one lane-contiguous (N, E) buffer, ONE out_proj matmul.
    attn = jnp.concatenate(head_outs, axis=-1)                        # (N, E)
    attn = jnp.dot(attn.astype(MXU_DTYPE), wo_ref[...],
                   preferred_element_type=jnp.float32) + bo_ref[...]

    # ---- residual + LayerNorm1 (post-norm) ----
    y = _layernorm(x + attn, ln1g_ref[...], ln1b_ref[...])

    # ---- feed-forward: lin1 + relu + lin2 (VMEM-resident intermediate) ----
    h1 = jnp.dot(y.astype(MXU_DTYPE), w1_ref[...],
                 preferred_element_type=jnp.float32) + b1_ref[...]    # (N, F)
    h1 = jnp.maximum(h1, 0.0)
    ff = jnp.dot(h1.astype(MXU_DTYPE), w2_ref[...],
                 preferred_element_type=jnp.float32) + b2_ref[...]    # (N, E)

    # ---- residual + LayerNorm2; write carry ----
    z = _layernorm(y + ff, ln2g_ref[...], ln2b_ref[...])
    outx_ref[...] = z.astype(outx_ref.dtype)

    # ---- last layer: fc_out prediction ----
    @pl.when(l == n_layers - 1)
    def _():
        future_ref[...] = (jnp.dot(z.astype(MXU_DTYPE), fcw_ref[...],
                                   preferred_element_type=jnp.float32)
                           + fcb_ref[...]).astype(future_ref.dtype)


# ------------------------------ host-side wrapper ------------------------------

def _vmem_budget_bytes(N, E, F):
    """Rough per-step VMEM budget (double-buffered bf16 weights + f32 intermediates)."""
    weights = 2 * 2 * (E * 3 * E + E * E + E * F + F * E + 2 * E * E)   # double-buffered
    acts = 4 * N * (3 * E + F + 8 * E)
    budget = weights + acts + (4 << 20)
    if budget <= (16 << 20):          # fits even v5e's default scoped limit -> use default
        return None
    return min(budget, 64 << 20)


def future_transformer_encoder(x, stacked, fc, num_heads):
    """x: (S, B, E). Returns (future_predictions, transformer_output), both (S, B, E)."""
    S, B, E = x.shape
    N = S * B
    L = stacked["wqkv"].shape[0]
    F = stacked["w1"].shape[2]

    # Seq-major flattening (no data movement): row n = s*B + b, batch id = n % B.
    x2 = x.reshape(N, E)

    def wspec(a):   # stacked per-layer tensor (L, d1, d2); layer dim squeezed out
        return pl.BlockSpec((None, a.shape[1], a.shape[2]), lambda l: (l, 0, 0))

    def cspec(a):   # layer-independent tensor, fully resident (same block every step)
        return pl.BlockSpec(a.shape, lambda l: (0,) * a.ndim)

    kernel = functools.partial(_encoder_kernel, num_heads=num_heads, batch=B)

    future2, out2 = pl.pallas_call(
        kernel,
        out_shape=(jax.ShapeDtypeStruct((N, E), jnp.float32),
                   jax.ShapeDtypeStruct((N, E), jnp.float32)),
        grid=(L,),
        in_specs=[
            cspec(x2),
            wspec(stacked["wqkv"]), wspec(stacked["bqkv"]),
            wspec(stacked["wo"]), wspec(stacked["bo"]),
            wspec(stacked["w1"]), wspec(stacked["b1"]),
            wspec(stacked["w2"]), wspec(stacked["b2"]),
            wspec(stacked["ln1g"]), wspec(stacked["ln1b"]),
            wspec(stacked["ln2g"]), wspec(stacked["ln2b"]),
            cspec(fc["w"]), cspec(fc["b"]),
        ],
        out_specs=(pl.BlockSpec((N, E), lambda l: (0, 0)),
                   pl.BlockSpec((N, E), lambda l: (0, 0))),
        compiler_params=pltpu.CompilerParams(
            dimension_semantics=("arbitrary",),          # layers are sequentially dependent
            vmem_limit_bytes=_vmem_budget_bytes(N, E, F)),
    )(x2, stacked["wqkv"], stacked["bqkv"], stacked["wo"], stacked["bo"],
      stacked["w1"], stacked["b1"], stacked["w2"], stacked["b2"],
      stacked["ln1g"], stacked["ln1b"], stacked["ln2g"], stacked["ln2b"],
      fc["w"], fc["b"])

    return future2.reshape(S, B, E), out2.reshape(S, B, E)


# --------------------------------- parameters ----------------------------------

def init_params(key, embed_dim, num_heads, num_layers, dim_feedforward):
    """Random parameters laid out like PyTorch nn.TransformerEncoderLayer."""
    E, F = embed_dim, dim_feedforward
    scale = 0.02
    layers = []
    for l in range(num_layers):
        k = jax.random.fold_in(key, l)
        ks = jax.random.split(k, 6)
        layers.append(dict(
            in_proj_w=jax.random.normal(ks[0], (3 * E, E), jnp.float32) * scale,
            in_proj_b=jax.random.normal(ks[1], (3 * E,), jnp.float32) * scale,
            out_proj_w=jax.random.normal(ks[2], (E, E), jnp.float32) * scale,
            out_proj_b=jnp.zeros((E,), jnp.float32),
            lin1_w=jax.random.normal(ks[3], (F, E), jnp.float32) * scale,
            lin1_b=jnp.zeros((F,), jnp.float32),
            lin2_w=jax.random.normal(ks[4], (E, F), jnp.float32) * scale,
            lin2_b=jnp.zeros((E,), jnp.float32),
            ln1_g=jnp.ones((E,), jnp.float32), ln1_b=jnp.zeros((E,), jnp.float32),
            ln2_g=jnp.ones((E,), jnp.float32), ln2_b=jnp.zeros((E,), jnp.float32),
        ))
    kf = jax.random.fold_in(key, 10_000)
    k1, k2 = jax.random.split(kf)
    fc = dict(w=jax.random.normal(k1, (E, E), jnp.float32) * scale,
              b=jax.random.normal(k2, (E,), jnp.float32) * scale)
    return layers, fc


def prepare_params(layer_params, fc_params, num_heads, mxu_dtype=MXU_DTYPE):
    """One-time prep: pre-transpose weights, fold 1/sqrt(Dh) into the q projection,
    stack over layers, cast matmul weights to bf16 (biases / LN params stay f32)."""
    E = layer_params[0]["out_proj_w"].shape[0]
    Dh = E // num_heads
    scale = 1.0 / math.sqrt(Dh)

    def prep(p):
        wqkv = p["in_proj_w"].T                      # (E, 3E)
        bqkv = p["in_proj_b"]                        # (3E,)
        wqkv = wqkv.at[:, :E].multiply(scale)        # fold softmax scale into q
        bqkv = bqkv.at[:E].multiply(scale)
        return dict(
            wqkv=wqkv.astype(mxu_dtype),
            bqkv=bqkv.reshape(1, 3 * E).astype(jnp.float32),
            wo=p["out_proj_w"].T.astype(mxu_dtype),
            bo=p["out_proj_b"].reshape(1, E).astype(jnp.float32),
            w1=p["lin1_w"].T.astype(mxu_dtype),
            b1=p["lin1_b"].reshape(1, -1).astype(jnp.float32),
            w2=p["lin2_w"].T.astype(mxu_dtype),
            b2=p["lin2_b"].reshape(1, E).astype(jnp.float32),
            ln1g=p["ln1_g"].reshape(1, E).astype(jnp.float32),
            ln1b=p["ln1_b"].reshape(1, E).astype(jnp.float32),
            ln2g=p["ln2_g"].reshape(1, E).astype(jnp.float32),
            ln2b=p["ln2_b"].reshape(1, E).astype(jnp.float32),
        )

    prepped = [prep(p) for p in layer_params]
    stacked = jax.tree_util.tree_map(lambda *xs: jnp.stack(xs, axis=0), *prepped)
    fc = dict(w=fc_params["w"].T.astype(mxu_dtype),
              b=fc_params["b"].reshape(1, E).astype(jnp.float32))
    return stacked, fc


# ------------------------------ pure-JAX reference ------------------------------

def reference_forward(x, layers, fc, num_heads):
    """Eval-mode forward of the PyTorch module in plain JAX (f32)."""
    S, B, E = x.shape
    H = num_heads
    Dh = E // H

    def ln(y, g, b):
        m = jnp.mean(y, axis=-1, keepdims=True)
        v = jnp.mean(jnp.square(y - m), axis=-1, keepdims=True)
        return (y - m) / jnp.sqrt(v + LN_EPS) * g + b

    def mha(h, p):
        qkv = jnp.einsum('sbe,fe->sbf', h, p["in_proj_w"]) + p["in_proj_b"]
        q, k, v = jnp.split(qkv, 3, axis=-1)
        q = q.reshape(S, B, H, Dh).transpose(1, 2, 0, 3)
        k = k.reshape(S, B, H, Dh).transpose(1, 2, 0, 3)
        v = v.reshape(S, B, H, Dh).transpose(1, 2, 0, 3)
        s = jnp.einsum('bhqd,bhkd->bhqk', q, k) / math.sqrt(Dh)
        a = jax.nn.softmax(s, axis=-1)
        o = jnp.einsum('bhqk,bhkd->bhqd', a, v).transpose(2, 0, 1, 3).reshape(S, B, E)
        return jnp.einsum('sbe,fe->sbf', o, p["out_proj_w"]) + p["out_proj_b"]

    h = x
    for p in layers:
        h = ln(h + mha(h, p), p["ln1_g"], p["ln1_b"])
        f1 = jnp.maximum(jnp.einsum('sbe,fe->sbf', h, p["lin1_w"]) + p["lin1_b"], 0.0)
        f2 = jnp.einsum('sbf,ef->sbe', f1, p["lin2_w"]) + p["lin2_b"]
        h = ln(h + f2, p["ln2_g"], p["ln2_b"])
    fut = jnp.einsum('sbe,fe->sbf', h, fc["w"]) + fc["b"]
    return fut, h


# ------------------------------------ main --------------------------------------

if __name__ == "__main__":
    # Small shapes consistent with the module: (seq, batch, embed) input.
    SEQ, BATCH = 8, 2
    EMBED_DIM, NUM_HEADS, NUM_LAYERS, DIM_FF = 128, 4, 2, 256

    key = jax.random.PRNGKey(0)
    kx, kp = jax.random.split(key)
    x = jax.random.normal(kx, (SEQ, BATCH, EMBED_DIM), jnp.float32)

    layers, fc_raw = init_params(kp, EMBED_DIM, NUM_HEADS, NUM_LAYERS, DIM_FF)
    stacked, fc = prepare_params(layers, fc_raw, NUM_HEADS)   # one-time weight prep

    fwd = jax.jit(functools.partial(future_transformer_encoder, num_heads=NUM_HEADS))
    future_predictions, transformer_output = fwd(x, stacked, fc)
    jax.block_until_ready((future_predictions, transformer_output))

    assert future_predictions.shape == (SEQ, BATCH, EMBED_DIM)
    assert transformer_output.shape == (SEQ, BATCH, EMBED_DIM)
    assert bool(jnp.all(jnp.isfinite(future_predictions)))
    assert bool(jnp.all(jnp.isfinite(transformer_output)))

    # Numerical check vs. a pure-JAX f32 reference (bf16 matmul weights -> loose tolerance).
    fut_ref, out_ref = reference_forward(x, layers, fc_raw, NUM_HEADS)
    err_out = float(jnp.max(jnp.abs(transformer_output - out_ref)))
    err_fut = float(jnp.max(jnp.abs(future_predictions - fut_ref)))
    assert err_out < 5e-2 and err_fut < 5e-2, (err_out, err_fut)

    print("KERNEL_OK")
</pallas_src>

<mosaic_0001>
module attributes {stable_mosaic.version = 11 : i64} {
  func.func @_encoder_kernel(%arg0: i32, %arg1: memref<16x128xf32, #tpu.memory_space<vmem>>, %arg2: memref<1x128x384xbf16, #tpu.memory_space<vmem>>, %arg3: memref<1x1x384xf32, #tpu.memory_space<vmem>>, %arg4: memref<1x128x128xbf16, #tpu.memory_space<vmem>>, %arg5: memref<1x1x128xf32, #tpu.memory_space<vmem>>, %arg6: memref<1x128x256xbf16, #tpu.memory_space<vmem>>, %arg7: memref<1x1x256xf32, #tpu.memory_space<vmem>>, %arg8: memref<1x256x128xbf16, #tpu.memory_space<vmem>>, %arg9: memref<1x1x128xf32, #tpu.memory_space<vmem>>, %arg10: memref<1x1x128xf32, #tpu.memory_space<vmem>>, %arg11: memref<1x1x128xf32, #tpu.memory_space<vmem>>, %arg12: memref<1x1x128xf32, #tpu.memory_space<vmem>>, %arg13: memref<1x1x128xf32, #tpu.memory_space<vmem>>, %arg14: memref<128x128xbf16, #tpu.memory_space<vmem>>, %arg15: memref<1x128xf32, #tpu.memory_space<vmem>>, %arg16: memref<16x128xf32, #tpu.memory_space<vmem>>, %arg17: memref<16x128xf32, #tpu.memory_space<vmem>>) attributes {dimension_semantics = [#tpu.dimension_semantics<arbitrary>], iteration_bounds = array<i64: 2>, scalar_prefetch = 0 : i64, scratch_operands = 0 : i64, tpu.core_type = #tpu.core_type<tc>, window_params = [{pipeline_mode = #tpu.pipeline_mode<synchronous>, transform_indices = @transform_0, window_bounds = array<i64: 16, 128>}, {transform_indices = @transform_1, window_bounds = array<i64: 1, 128, 384>}, {transform_indices = @transform_2, window_bounds = array<i64: 1, 1, 384>}, {transform_indices = @transform_3, window_bounds = array<i64: 1, 128, 128>}, {transform_indices = @transform_4, window_bounds = array<i64: 1, 1, 128>}, {transform_indices = @transform_5, window_bounds = array<i64: 1, 128, 256>}, {transform_indices = @transform_6, window_bounds = array<i64: 1, 1, 256>}, {transform_indices = @transform_7, window_bounds = array<i64: 1, 256, 128>}, {transform_indices = @transform_8, window_bounds = array<i64: 1, 1, 128>}, {transform_indices = @transform_9, window_bounds = array<i64: 1, 1, 128>}, {transform_indices = @transform_10, window_bounds = array<i64: 1, 1, 128>}, {transform_indices = @transform_11, window_bounds = array<i64: 1, 1, 128>}, {transform_indices = @transform_12, window_bounds = array<i64: 1, 1, 128>}, {pipeline_mode = #tpu.pipeline_mode<synchronous>, transform_indices = @transform_13, window_bounds = array<i64: 128, 128>}, {pipeline_mode = #tpu.pipeline_mode<synchronous>, transform_indices = @transform_14, window_bounds = array<i64: 1, 128>}, {pipeline_mode = #tpu.pipeline_mode<synchronous>, transform_indices = @transform_15, window_bounds = array<i64: 16, 128>}, {pipeline_mode = #tpu.pipeline_mode<synchronous>, transform_indices = @transform_16, window_bounds = array<i64: 16, 128>}]} {
    %c0_i32 = arith.constant 0 : i32
    %0 = arith.cmpi eq, %arg0, %c0_i32 : i32
    %1 = arith.extui %0 : i1 to i32
    %c0_i32_0 = arith.constant 0 : i32
    %2 = arith.cmpi ne, %1, %c0_i32_0 : i32
    scf.if %2 {
      %c0_88 = arith.constant 0 : index
      %c0_89 = arith.constant 0 : index
      %211 = vector.load %arg1[%c0_88, %c0_89] : memref<16x128xf32, #tpu.memory_space<vmem>>, vector<16x128xf32>
      %c0_90 = arith.constant 0 : index
      %c0_91 = arith.constant 0 : index
      %212 = vector.load %arg17[%c0_90, %c0_91] : memref<16x128xf32, #tpu.memory_space<vmem>>, vector<16x128xf32>
      tpu.vector_store %arg17[%c0_90, %c0_91], %211 {strides = array<i32>} : memref<16x128xf32, #tpu.memory_space<vmem>>, vector<16x128xf32>,
    } else {
    }
    %c0 = arith.constant 0 : index
    %c0_1 = arith.constant 0 : index
    %3 = vector.load %arg17[%c0, %c0_1] : memref<16x128xf32, #tpu.memory_space<vmem>>, vector<16x128xf32>
    %4 = arith.truncf %3 : vector<16x128xf32> to vector<16x128xbf16>
    %c0_2 = arith.constant 0 : index
    %c0_3 = arith.constant 0 : index
    %c0_4 = arith.constant 0 : index
    %5 = vector.load %arg2[%c0_2, %c0_3, %c0_4] : memref<1x128x384xbf16, #tpu.memory_space<vmem>>, vector<1x128x384xbf16>
    %6 = vector.shape_cast %5 : vector<1x128x384xbf16> to vector<128x384xbf16>
    %cst = arith.constant dense<0.000000e+00> : vector<16x384xf32>
    %7 = tpu.matmul %4, %6, %cst {dimension_numbers = #tpu.dot_dimension_numbers<[1], [0], [0], [1], [0, 0, 1, 1], [], []>} : vector<16x128xbf16>, vector<128x384xbf16>, vector<16x384xf32> -> vector<16x384xf32>
    %c0_5 = arith.constant 0 : index
    %c0_6 = arith.constant 0 : index
    %c0_7 = arith.constant 0 : index
    %8 = vector.load %arg3[%c0_5, %c0_6, %c0_7] : memref<1x1x384xf32, #tpu.memory_space<vmem>>, vector<1x1x384xf32>
    %9 = vector.shape_cast %8 : vector<1x1x384xf32> to vector<1x384xf32>
    %10 = vector.broadcast %9 : vector<1x384xf32> to vector<16x384xf32>
    %11 = arith.addf %7, %10 : vector<16x384xf32>
    %12 = vector.extract_strided_slice %11 {offsets = [0, 0], sizes = [16, 128], strides = [1, 1]} : vector<16x384xf32> to vector<16x128xf32>
    %13 = arith.truncf %12 : vector<16x128xf32> to vector<16x128xbf16>
    %14 = vector.extract_strided_slice %11 {offsets = [0, 128], sizes = [16, 128], strides = [1, 1]} : vector<16x384xf32> to vector<16x128xf32>
    %15 = tpu.transpose %14, [1, 0] : vector<16x128xf32> -> vector<128x16xf32>
    %16 = arith.truncf %15 : vector<128x16xf32> to vector<128x16xbf16>
    %17 = vector.extract_strided_slice %11 {offsets = [0, 256], sizes = [16, 128], strides = [1, 1]} : vector<16x384xf32> to vector<16x128xf32>
    %18 = arith.truncf %17 : vector<16x128xf32> to vector<16x128xbf16>
    %19 = tpu.iota {dimensions = array<i32: 0>} : vector<16x16xi32>
    %c2_i32 = arith.constant 2 : i32
    %c0_i32_8 = arith.constant 0 : i32
    %20 = arith.cmpi eq, %c2_i32, %c0_i32_8 : i32
    %c1_i32 = arith.constant 1 : i32
    %21 = arith.select %20, %c1_i32, %c2_i32 : i32
    %22 = vector.broadcast %21 : i32 to vector<16x16xi32>
    %23 = arith.remsi %19, %22 : vector<16x16xi32>
    %c0_i32_9 = arith.constant 0 : i32
    %24 = vector.broadcast %c0_i32_9 : i32 to vector<16x16xi32>
    %25 = arith.cmpi ne, %23, %24 : vector<16x16xi32>
    %c0_i32_10 = arith.constant 0 : i32
    %26 = vector.broadcast %c0_i32_10 : i32 to vector<16x16xi32>
    %27 = arith.cmpi slt, %23, %26 : vector<16x16xi32>
    %c0_i32_11 = arith.constant 0 : i32
    %28 = arith.cmpi slt, %21, %c0_i32_11 : i32
    %29 = vector.broadcast %28 : i1 to vector<16x16xi1>
    %30 = vector.broadcast %29 : vector<16x16xi1> to vector<16x16xi1>
    %31 = arith.xori %27, %30 : vector<16x16xi1>
    %32 = arith.andi %31, %25 : vector<16x16xi1>
    %33 = vector.broadcast %21 : i32 to vector<16x16xi32>
    %34 = arith.addi %23, %33 : vector<16x16xi32>
    %35 = arith.select %32, %34, %23 : vector<16x16xi1>, vector<16x16xi32>
    %36 = tpu.iota {dimensions = array<i32: 1>} : vector<16x16xi32>
    %c2_i32_12 = arith.constant 2 : i32
    %c0_i32_13 = arith.constant 0 : i32
    %37 = arith.cmpi eq, %c2_i32_12, %c0_i32_13 : i32
    %c1_i32_14 = arith.constant 1 : i32
    %38 = arith.select %37, %c1_i32_14, %c2_i32_12 : i32
    %39 = vector.broadcast %38 : i32 to vector<16x16xi32>
    %40 = arith.remsi %36, %39 : vector<16x16xi32>
    %c0_i32_15 = arith.constant 0 : i32
    %41 = vector.broadcast %c0_i32_15 : i32 to vector<16x16xi32>
    %42 = arith.cmpi ne, %40, %41 : vector<16x16xi32>
    %c0_i32_16 = arith.constant 0 : i32
    %43 = vector.broadcast %c0_i32_16 : i32 to vector<16x16xi32>
    %44 = arith.cmpi slt, %40, %43 : vector<16x16xi32>
    %c0_i32_17 = arith.constant 0 : i32
    %45 = arith.cmpi slt, %38, %c0_i32_17 : i32
    %46 = vector.broadcast %45 : i1 to vector<16x16xi1>
    %47 = vector.broadcast %46 : vector<16x16xi1> to vector<16x16xi1>
    %48 = arith.xori %44, %47 : vector<16x16xi1>
    %49 = arith.andi %48, %42 : vector<16x16xi1>
    %50 = vector.broadcast %38 : i32 to vector<16x16xi32>
    %51 = arith.addi %40, %50 : vector<16x16xi32>
    %52 = arith.select %49, %51, %40 : vector<16x16xi1>, vector<16x16xi32>
    %53 = arith.cmpi eq, %35, %52 : vector<16x16xi32>
    %54 = vector.extract_strided_slice %13 {offsets = [0, 0], sizes = [16, 32], strides = [1, 1]} : vector<16x128xbf16> to vector<16x32xbf16>
    %55 = vector.extract_strided_slice %16 {offsets = [0, 0], sizes = [32, 16], strides = [1, 1]} : vector<128x16xbf16> to vector<32x16xbf16>
    %cst_18 = arith.constant dense<0.000000e+00> : vector<16x16xf32>
    %56 = tpu.matmul %54, %55, %cst_18 {dimension_numbers = #tpu.dot_dimension_numbers<[1], [0], [0], [1], [0, 0, 1, 1], [], []>} : vector<16x32xbf16>, vector<32x16xbf16>, vector<16x16xf32> -> vector<16x16xf32>
    %cst_19 = arith.constant -1.000000e+30 : f32
    %57 = vector.broadcast %cst_19 : f32 to vector<16x16xf32>
    %58 = arith.select %53, %56, %57 : vector<16x16xi1>, vector<16x16xf32>
    %cst_20 = arith.constant dense<0xFF800000> : vector<16xf32>
    %59 = vector.multi_reduction <maximumf>, %58, %cst_20 [1] : vector<16x16xf32> to vector<16xf32>
    %60 = vector.shape_cast %59 : vector<16xf32> to vector<16x1xf32>
    %61 = vector.broadcast %60 : vector<16x1xf32> to vector<16x16xf32>
    %62 = arith.subf %58, %61 : vector<16x16xf32>
    %63 = math.exp %62 : vector<16x16xf32>
    %cst_21 = arith.constant dense<0.000000e+00> : vector<16xf32>
    %64 = vector.multi_reduction <add>, %63, %cst_21 [1] : vector<16x16xf32> to vector<16xf32>
    %65 = vector.shape_cast %64 : vector<16xf32> to vector<16x1xf32>
    %66 = vector.broadcast %65 : vector<16x1xf32> to vector<16x16xf32>
    %67 = arith.divf %63, %66 : vector<16x16xf32>
    %68 = arith.truncf %67 : vector<16x16xf32> to vector<16x16xbf16>
    %69 = vector.extract_strided_slice %18 {offsets = [0, 0], sizes = [16, 32], strides = [1, 1]} : vector<16x128xbf16> to vector<16x32xbf16>
    %cst_22 = arith.constant dense<0.000000e+00> : vector<16x32xf32>
    %70 = tpu.matmul %68, %69, %cst_22 {dimension_numbers = #tpu.dot_dimension_numbers<[1], [0], [0], [1], [0, 0, 1, 1], [], []>} : vector<16x16xbf16>, vector<16x32xbf16>, vector<16x32xf32> -> vector<16x32xf32>
    %71 = vector.extract_strided_slice %13 {offsets = [0, 32], sizes = [16, 32], strides = [1, 1]} : vector<16x128xbf16> to vector<16x32xbf16>
    %72 = vector.extract_strided_slice %16 {offsets = [32, 0], sizes = [32, 16], strides = [1, 1]} : vector<128x16xbf16> to vector<32x16xbf16>
    %cst_23 = arith.constant dense<0.000000e+00> : vector<16x16xf32>
    %73 = tpu.matmul %71, %72, %cst_23 {dimension_numbers = #tpu.dot_dimension_numbers<[1], [0], [0], [1], [0, 0, 1, 1], [], []>} : vector<16x32xbf16>, vector<32x16xbf16>, vector<16x16xf32> -> vector<16x16xf32>
    %cst_24 = arith.constant -1.000000e+30 : f32
    %74 = vector.broadcast %cst_24 : f32 to vector<16x16xf32>
    %75 = arith.select %53, %73, %74 : vector<16x16xi1>, vector<16x16xf32>
    %cst_25 = arith.constant dense<0xFF800000> : vector<16xf32>
    %76 = vector.multi_reduction <maximumf>, %75, %cst_25 [1] : vector<16x16xf32> to vector<16xf32>
    %77 = vector.shape_cast %76 : vector<16xf32> to vector<16x1xf32>
    %78 = vector.broadcast %77 : vector<16x1xf32> to vector<16x16xf32>
    %79 = arith.subf %75, %78 : vector<16x16xf32>
    %80 = math.exp %79 : vector<16x16xf32>
    %cst_26 = arith.constant dense<0.000000e+00> : vector<16xf32>
    %81 = vector.multi_reduction <add>, %80, %cst_26 [1] : vector<16x16xf32> to vector<16xf32>
    %82 = vector.shape_cast %81 : vector<16xf32> to vector<16x1xf32>
    %83 = vector.broadcast %82 : vector<16x1xf32> to vector<16x16xf32>
    %84 = arith.divf %80, %83 : vector<16x16xf32>
    %85 = arith.truncf %84 : vector<16x16xf32> to vector<16x16xbf16>
    %86 = vector.extract_strided_slice %18 {offsets = [0, 32], sizes = [16, 32], strides = [1, 1]} : vector<16x128xbf16> to vector<16x32xbf16>
    %cst_27 = arith.constant dense<0.000000e+00> : vector<16x32xf32>
    %87 = tpu.matmul %85, %86, %cst_27 {dimension_numbers = #tpu.dot_dimension_numbers<[1], [0], [0], [1], [0, 0, 1, 1], [], []>} : vector<16x16xbf16>, vector<16x32xbf16>, vector<16x32xf32> -> vector<16x32xf32>
    %88 = vector.extract_strided_slice %13 {offsets = [0, 64], sizes = [16, 32], strides = [1, 1]} : vector<16x128xbf16> to vector<16x32xbf16>
    %89 = vector.extract_strided_slice %16 {offsets = [64, 0], sizes = [32, 16], strides = [1, 1]} : vector<128x16xbf16> to vector<32x16xbf16>
    %cst_28 = arith.constant dense<0.000000e+00> : vector<16x16xf32>
    %90 = tpu.matmul %88, %89, %cst_28 {dimension_numbers = #tpu.dot_dimension_numbers<[1], [0], [0], [1], [0, 0, 1, 1], [], []>} : vector<16x32xbf16>, vector<32x16xbf16>, vector<16x16xf32> -> vector<16x16xf32>
    %cst_29 = arith.constant -1.000000e+30 : f32
    %91 = vector.broadcast %cst_29 : f32 to vector<16x16xf32>
    %92 = arith.select %53, %90, %91 : vector<16x16xi1>, vector<16x16xf32>
    %cst_30 = arith.constant dense<0xFF800000> : vector<16xf32>
    %93 = vector.multi_reduction <maximumf>, %92, %cst_30 [1] : vector<16x16xf32> to vector<16xf32>
    %94 = vector.shape_cast %93 : vector<16xf32> to vector<16x1xf32>
    %95 = vector.broadcast %94 : vector<16x1xf32> to vector<16x16xf32>
    %96 = arith.subf %92, %95 : vector<16x16xf32>
    %97 = math.exp %96 : vector<16x16xf32>
    %cst_31 = arith.constant dense<0.000000e+00> : vector<16xf32>
    %98 = vector.multi_reduction <add>, %97, %cst_31 [1] : vector<16x16xf32> to vector<16xf32>
    %99 = vector.shape_cast %98 : vector<16xf32> to vector<16x1xf32>
    %100 = vector.broadcast %99 : vector<16x1xf32> to vector<16x16xf32>
    %101 = arith.divf %97, %100 : vector<16x16xf32>
    %102 = arith.truncf %101 : vector<16x16xf32> to vector<16x16xbf16>
    %103 = vector.extract_strided_slice %18 {offsets = [0, 64], sizes = [16, 32], strides = [1, 1]} : vector<16x128xbf16> to vector<16x32xbf16>
    %cst_32 = arith.constant dense<0.000000e+00> : vector<16x32xf32>
    %104 = tpu.matmul %102, %103, %cst_32 {dimension_numbers = #tpu.dot_dimension_numbers<[1], [0], [0], [1], [0, 0, 1, 1], [], []>} : vector<16x16xbf16>, vector<16x32xbf16>, vector<16x32xf32> -> vector<16x32xf32>
    %105 = vector.extract_strided_slice %13 {offsets = [0, 96], sizes = [16, 32], strides = [1, 1]} : vector<16x128xbf16> to vector<16x32xbf16>
    %106 = vector.extract_strided_slice %16 {offsets = [96, 0], sizes = [32, 16], strides = [1, 1]} : vector<128x16xbf16> to vector<32x16xbf16>
    %cst_33 = arith.constant dense<0.000000e+00> : vector<16x16xf32>
    %107 = tpu.matmul %105, %106, %cst_33 {dimension_numbers = #tpu.dot_dimension_numbers<[1], [0], [0], [1], [0, 0, 1, 1], [], []>} : vector<16x32xbf16>, vector<32x16xbf16>, vector<16x16xf32> -> vector<16x16xf32>
    %cst_34 = arith.constant -1.000000e+30 : f32
    %108 = vector.broadcast %cst_34 : f32 to vector<16x16xf32>
    %109 = arith.select %53, %107, %108 : vector<16x16xi1>, vector<16x16xf32>
    %cst_35 = arith.constant dense<0xFF800000> : vector<16xf32>
    %110 = vector.multi_reduction <maximumf>, %109, %cst_35 [1] : vector<16x16xf32> to vector<16xf32>
    %111 = vector.shape_cast %110 : vector<16xf32> to vector<16x1xf32>
    %112 = vector.broadcast %111 : vector<16x1xf32> to vector<16x16xf32>
    %113 = arith.subf %109, %112 : vector<16x16xf32>
    %114 = math.exp %113 : vector<16x16xf32>
    %cst_36 = arith.constant dense<0.000000e+00> : vector<16xf32>
    %115 = vector.multi_reduction <add>, %114, %cst_36 [1] : vector<16x16xf32> to vector<16xf32>
    %116 = vector.shape_cast %115 : vector<16xf32> to vector<16x1xf32>
    %117 = vector.broadcast %116 : vector<16x1xf32> to vector<16x16xf32>
    %118 = arith.divf %114, %117 : vector<16x16xf32>
    %119 = arith.truncf %118 : vector<16x16xf32> to vector<16x16xbf16>
    %120 = vector.extract_strided_slice %18 {offsets = [0, 96], sizes = [16, 32], strides = [1, 1]} : vector<16x128xbf16> to vector<16x32xbf16>
    %cst_37 = arith.constant dense<0.000000e+00> : vector<16x32xf32>
    %121 = tpu.matmul %119, %120, %cst_37 {dimension_numbers = #tpu.dot_dimension_numbers<[1], [0], [0], [1], [0, 0, 1, 1], [], []>} : vector<16x16xbf16>, vector<16x32xbf16>, vector<16x32xf32> -> vector<16x32xf32>
    %122 = tpu.concatenate %70, %87, %104, %121 in 1 : vector<16x32xf32>, vector<16x32xf32>, vector<16x32xf32>, vector<16x32xf32> -> vector<16x128xf32>
    %123 = arith.truncf %122 : vector<16x128xf32> to vector<16x128xbf16>
    %c0_38 = arith.constant 0 : index
    %c0_39 = arith.constant 0 : index
    %c0_40 = arith.constant 0 : index
    %124 = vector.load %arg4[%c0_38, %c0_39, %c0_40] : memref<1x128x128xbf16, #tpu.memory_space<vmem>>, vector<1x128x128xbf16>
    %125 = vector.shape_cast %124 : vector<1x128x128xbf16> to vector<128x128xbf16>
    %cst_41 = arith.constant dense<0.000000e+00> : vector<16x128xf32>
    %126 = tpu.matmul %123, %125, %cst_41 {dimension_numbers = #tpu.dot_dimension_numbers<[1], [0], [0], [1], [0, 0, 1, 1], [], []>} : vector<16x128xbf16>, vector<128x128xbf16>, vector<16x128xf32> -> vector<16x128xf32>
    %c0_42 = arith.constant 0 : index
    %c0_43 = arith.constant 0 : index
    %c0_44 = arith.constant 0 : index
    %127 = vector.load %arg5[%c0_42, %c0_43, %c0_44] : memref<1x1x128xf32, #tpu.memory_space<vmem>>, vector<1x1x128xf32>
    %128 = vector.shape_cast %127 : vector<1x1x128xf32> to vector<1x128xf32>
    %129 = vector.broadcast %128 : vector<1x128xf32> to vector<16x128xf32>
    %130 = arith.addf %126, %129 : vector<16x128xf32>
    %131 = arith.addf %3, %130 : vector<16x128xf32>
    %c0_45 = arith.constant 0 : index
    %c0_46 = arith.constant 0 : index
    %c0_47 = arith.constant 0 : index
    %132 = vector.load %arg10[%c0_45, %c0_46, %c0_47] : memref<1x1x128xf32, #tpu.memory_space<vmem>>, vector<1x1x128xf32>
    %133 = vector.shape_cast %132 : vector<1x1x128xf32> to vector<1x128xf32>
    %c0_48 = arith.constant 0 : index
    %c0_49 = arith.constant 0 : index
    %c0_50 = arith.constant 0 : index
    %134 = vector.load %arg11[%c0_48, %c0_49, %c0_50] : memref<1x1x128xf32, #tpu.memory_space<vmem>>, vector<1x1x128xf32>
    %135 = vector.shape_cast %134 : vector<1x1x128xf32> to vector<1x128xf32>
    %cst_51 = arith.constant dense<0.000000e+00> : vector<16xf32>
    %136 = vector.multi_reduction <add>, %131, %cst_51 [1] : vector<16x128xf32> to vector<16xf32>
    %137 = vector.shape_cast %136 : vector<16xf32> to vector<16x1xf32>
    %138 = arith.mulf %131, %131 : vector<16x128xf32>
    %cst_52 = arith.constant dense<0.000000e+00> : vector<16xf32>
    %139 = vector.multi_reduction <add>, %138, %cst_52 [1] : vector<16x128xf32> to vector<16xf32>
    %140 = vector.shape_cast %139 : vector<16xf32> to vector<16x1xf32>
    %cst_53 = arith.constant 7.812500e-03 : f32
    %141 = vector.broadcast %cst_53 : f32 to vector<16x1xf32>
    %142 = arith.mulf %137, %141 : vector<16x1xf32>
    %cst_54 = arith.constant 7.812500e-03 : f32
    %143 = vector.broadcast %cst_54 : f32 to vector<16x1xf32>
    %144 = arith.mulf %140, %143 : vector<16x1xf32>
    %145 = arith.mulf %142, %142 : vector<16x1xf32>
    %146 = arith.subf %144, %145 : vector<16x1xf32>
    %cst_55 = arith.constant 0.000000e+00 : f32
    %147 = vector.broadcast %cst_55 : f32 to vector<16x1xf32>
    %148 = arith.maximumf %146, %147 : vector<16x1xf32>
    %149 = vector.broadcast %142 : vector<16x1xf32> to vector<16x128xf32>
    %150 = arith.subf %131, %149 : vector<16x128xf32>
    %cst_56 = arith.constant 9.99999974E-6 : f32
    %151 = vector.broadcast %cst_56 : f32 to vector<16x1xf32>
    %152 = arith.addf %148, %151 : vector<16x1xf32>
    %153 = math.rsqrt %152 : vector<16x1xf32>
    %154 = vector.broadcast %153 : vector<16x1xf32> to vector<16x128xf32>
    %155 = arith.mulf %150, %154 : vector<16x128xf32>
    %156 = vector.broadcast %133 : vector<1x128xf32> to vector<16x128xf32>
    %157 = arith.mulf %155, %156 : vector<16x128xf32>
    %158 = vector.broadcast %135 : vector<1x128xf32> to vector<16x128xf32>
    %159 = arith.addf %157, %158 : vector<16x128xf32>
    %160 = arith.truncf %159 : vector<16x128xf32> to vector<16x128xbf16>
    %c0_57 = arith.constant 0 : index
    %c0_58 = arith.constant 0 : index
    %c0_59 = arith.constant 0 : index
    %161 = vector.load %arg6[%c0_57, %c0_58, %c0_59] : memref<1x128x256xbf16, #tpu.memory_space<vmem>>, vector<1x128x256xbf16>
    %162 = vector.shape_cast %161 : vector<1x128x256xbf16> to vector<128x256xbf16>
    %cst_60 = arith.constant dense<0.000000e+00> : vector<16x256xf32>
    %163 = tpu.matmul %160, %162, %cst_60 {dimension_numbers = #tpu.dot_dimension_numbers<[1], [0], [0], [1], [0, 0, 1, 1], [], []>} : vector<16x128xbf16>, vector<128x256xbf16>, vector<16x256xf32> -> vector<16x256xf32>
    %c0_61 = arith.constant 0 : index
    %c0_62 = arith.constant 0 : index
    %c0_63 = arith.constant 0 : index
    %164 = vector.load %arg7[%c0_61, %c0_62, %c0_63] : memref<1x1x256xf32, #tpu.memory_space<vmem>>, vector<1x1x256xf32>
    %165 = vector.shape_cast %164 : vector<1x1x256xf32> to vector<1x256xf32>
    %166 = vector.broadcast %165 : vector<1x256xf32> to vector<16x256xf32>
    %167 = arith.addf %163, %166 : vector<16x256xf32>
    %cst_64 = arith.constant 0.000000e+00 : f32
    %168 = vector.broadcast %cst_64 : f32 to vector<16x256xf32>
    %169 = arith.maximumf %167, %168 : vector<16x256xf32>
    %170 = arith.truncf %169 : vector<16x256xf32> to vector<16x256xbf16>
    %c0_65 = arith.constant 0 : index
    %c0_66 = arith.constant 0 : index
    %c0_67 = arith.constant 0 : index
    %171 = vector.load %arg8[%c0_65, %c0_66, %c0_67] : memref<1x256x128xbf16, #tpu.memory_space<vmem>>, vector<1x256x128xbf16>
    %172 = vector.shape_cast %171 : vector<1x256x128xbf16> to vector<256x128xbf16>
    %cst_68 = arith.constant dense<0.000000e+00> : vector<16x128xf32>
    %173 = tpu.matmul %170, %172, %cst_68 {dimension_numbers = #tpu.dot_dimension_numbers<[1], [0], [0], [1], [0, 0, 1, 1], [], []>} : vector<16x256xbf16>, vector<256x128xbf16>, vector<16x128xf32> -> vector<16x128xf32>
    %c0_69 = arith.constant 0 : index
    %c0_70 = arith.constant 0 : index
    %c0_71 = arith.constant 0 : index
    %174 = vector.load %arg9[%c0_69, %c0_70, %c0_71] : memref<1x1x128xf32, #tpu.memory_space<vmem>>, vector<1x1x128xf32>
    %175 = vector.shape_cast %174 : vector<1x1x128xf32> to vector<1x128xf32>
    %176 = vector.broadcast %175 : vector<1x128xf32> to vector<16x128xf32>
    %177 = arith.addf %173, %176 : vector<16x128xf32>
    %178 = arith.addf %159, %177 : vector<16x128xf32>
    %c0_72 = arith.constant 0 : index
    %c0_73 = arith.constant 0 : index
    %c0_74 = arith.constant 0 : index
    %179 = vector.load %arg12[%c0_72, %c0_73, %c0_74] : memref<1x1x128xf32, #tpu.memory_space<vmem>>, vector<1x1x128xf32>
    %180 = vector.shape_cast %179 : vector<1x1x128xf32> to vector<1x128xf32>
    %c0_75 = arith.constant 0 : index
    %c0_76 = arith.constant 0 : index
    %c0_77 = arith.constant 0 : index
    %181 = vector.load %arg13[%c0_75, %c0_76, %c0_77] : memref<1x1x128xf32, #tpu.memory_space<vmem>>, vector<1x1x128xf32>
    %182 = vector.shape_cast %181 : vector<1x1x128xf32> to vector<1x128xf32>
    %cst_78 = arith.constant dense<0.000000e+00> : vector<16xf32>
    %183 = vector.multi_reduction <add>, %178, %cst_78 [1] : vector<16x128xf32> to vector<16xf32>
    %184 = vector.shape_cast %183 : vector<16xf32> to vector<16x1xf32>
    %185 = arith.mulf %178, %178 : vector<16x128xf32>
    %cst_79 = arith.constant dense<0.000000e+00> : vector<16xf32>
    %186 = vector.multi_reduction <add>, %185, %cst_79 [1] : vector<16x128xf32> to vector<16xf32>
    %187 = vector.shape_cast %186 : vector<16xf32> to vector<16x1xf32>
    %cst_80 = arith.constant 7.812500e-03 : f32
    %188 = vector.broadcast %cst_80 : f32 to vector<16x1xf32>
    %189 = arith.mulf %184, %188 : vector<16x1xf32>
    %cst_81 = arith.constant 7.812500e-03 : f32
    %190 = vector.broadcast %cst_81 : f32 to vector<16x1xf32>
    %191 = arith.mulf %187, %190 : vector<16x1xf32>
    %192 = arith.mulf %189, %189 : vector<16x1xf32>
    %193 = arith.subf %191, %192 : vector<16x1xf32>
    %cst_82 = arith.constant 0.000000e+00 : f32
    %194 = vector.broadcast %cst_82 : f32 to vector<16x1xf32>
    %195 = arith.maximumf %193, %194 : vector<16x1xf32>
    %196 = vector.broadcast %189 : vector<16x1xf32> to vector<16x128xf32>
    %197 = arith.subf %178, %196 : vector<16x128xf32>
    %cst_83 = arith.constant 9.99999974E-6 : f32
    %198 = vector.broadcast %cst_83 : f32 to vector<16x1xf32>
    %199 = arith.addf %195, %198 : vector<16x1xf32>
    %200 = math.rsqrt %199 : vector<16x1xf32>
    %201 = vector.broadcast %200 : vector<16x1xf32> to vector<16x128xf32>
    %202 = arith.mulf %197, %201 : vector<16x128xf32>
    %203 = vector.broadcast %180 : vector<1x128xf32> to vector<16x128xf32>
    %204 = arith.mulf %202, %203 : vector<16x128xf32>
    %205 = vector.broadcast %182 : vector<1x128xf32> to vector<16x128xf32>
    %206 = arith.addf %204, %205 : vector<16x128xf32>
    %c0_84 = arith.constant 0 : index
    %c0_85 = arith.constant 0 : index
    %207 = vector.load %arg17[%c0_84, %c0_85] : memref<16x128xf32, #tpu.memory_space<vmem>>, vector<16x128xf32>
    tpu.vector_store %arg17[%c0_84, %c0_85], %206 {strides = array<i32>} : memref<16x128xf32, #tpu.memory_space<vmem>>, vector<16x128xf32>,
    %c1_i32_86 = arith.constant 1 : i32
    %208 = arith.cmpi eq, %arg0, %c1_i32_86 : i32
    %209 = arith.extui %208 : i1 to i32
    %c0_i32_87 = arith.constant 0 : i32
    %210 = arith.cmpi ne, %209, %c0_i32_87 : i32
    scf.if %210 {
      %211 = arith.truncf %206 : vector<16x128xf32> to vector<16x128xbf16>
      %c0_88 = arith.constant 0 : index
      %c0_89 = arith.constant 0 : index
      %212 = vector.load %arg14[%c0_88, %c0_89] : memref<128x128xbf16, #tpu.memory_space<vmem>>, vector<128x128xbf16>
      %cst_90 = arith.constant dense<0.000000e+00> : vector<16x128xf32>
      %213 = tpu.matmul %211, %212, %cst_90 {dimension_numbers = #tpu.dot_dimension_numbers<[1], [0], [0], [1], [0, 0, 1, 1], [], []>} : vector<16x128xbf16>, vector<128x128xbf16>, vector<16x128xf32> -> vector<16x128xf32>
      %c0_91 = arith.constant 0 : index
      %c0_92 = arith.constant 0 : index
      %214 = vector.load %arg15[%c0_91, %c0_92] : memref<1x128xf32, #tpu.memory_space<vmem>>, vector<1x128xf32>
      %215 = vector.broadcast %214 : vector<1x128xf32> to vector<16x128xf32>
      %216 = arith.addf %213, %215 : vector<16x128xf32>
      %c0_93 = arith.constant 0 : index
      %c0_94 = arith.constant 0 : index
      %217 = vector.load %arg16[%c0_93, %c0_94] : memref<16x128xf32, #tpu.memory_space<vmem>>, vector<16x128xf32>
      tpu.vector_store %arg16[%c0_93, %c0_94], %216 {strides = array<i32>} : memref<16x128xf32, #tpu.memory_space<vmem>>, vector<16x128xf32>,
    } else {
    }
    return
  }
  func.func @transform_0(%arg0: i32) -> (i32, i32) {
    %c0_i32 = arith.constant 0 : i32
    %c0_i32_0 = arith.constant 0 : i32
    %c0_i32_1 = arith.constant 0 : i32
    return %c0_i32, %c0_i32_0 : i32, i32
  }
  func.func @transform_1(%arg0: i32) -> (i32, i32, i32) {
    %c0_i32 = arith.constant 0 : i32
    %c0_i32_0 = arith.constant 0 : i32
    %c0_i32_1 = arith.constant 0 : i32
    return %arg0, %c0_i32, %c0_i32_0 : i32, i32, i32
  }
  func.func @transform_2(%arg0: i32) -> (i32, i32, i32) {
    %c0_i32 = arith.constant 0 : i32
    %c0_i32_0 = arith.constant 0 : i32
    %c0_i32_1 = arith.constant 0 : i32
    return %arg0, %c0_i32, %c0_i32_0 : i32, i32, i32
  }
  func.func @transform_3(%arg0: i32) -> (i32, i32, i32) {
    %c0_i32 = arith.constant 0 : i32
    %c0_i32_0 = arith.constant 0 : i32
    %c0_i32_1 = arith.constant 0 : i32
    return %arg0, %c0_i32, %c0_i32_0 : i32, i32, i32
  }
  func.func @transform_4(%arg0: i32) -> (i32, i32, i32) {
    %c0_i32 = arith.constant 0 : i32
    %c0_i32_0 = arith.constant 0 : i32
    %c0_i32_1 = arith.constant 0 : i32
    return %arg0, %c0_i32, %c0_i32_0 : i32, i32, i32
  }
  func.func @transform_5(%arg0: i32) -> (i32, i32, i32) {
    %c0_i32 = arith.constant 0 : i32
    %c0_i32_0 = arith.constant 0 : i32
    %c0_i32_1 = arith.constant 0 : i32
    return %arg0, %c0_i32, %c0_i32_0 : i32, i32, i32
  }
  func.func @transform_6(%arg0: i32) -> (i32, i32, i32) {
    %c0_i32 = arith.constant 0 : i32
    %c0_i32_0 = arith.constant 0 : i32
    %c0_i32_1 = arith.constant 0 : i32
    return %arg0, %c0_i32, %c0_i32_0 : i32, i32, i32
  }
  func.func @transform_7(%arg0: i32) -> (i32, i32, i32) {
    %c0_i32 = arith.constant 0 : i32
    %c0_i32_0 = arith.constant 0 : i32
    %c0_i32_1 = arith.constant 0 : i32
    return %arg0, %c0_i32, %c0_i32_0 : i32, i32, i32
  }
  func.func @transform_8(%arg0: i32) -> (i32, i32, i32) {
    %c0_i32 = arith.constant 0 : i32
    %c0_i32_0 = arith.constant 0 : i32
    %c0_i32_1 = arith.constant 0 : i32
    return %arg0, %c0_i32, %c0_i32_0 : i32, i32, i32
  }
  func.func @transform_9(%arg0: i32) -> (i32, i32, i32) {
    %c0_i32 = arith.constant 0 : i32
    %c0_i32_0 = arith.constant 0 : i32
    %c0_i32_1 = arith.constant 0 : i32
    return %arg0, %c0_i32, %c0_i32_0 : i32, i32, i32
  }
  func.func @transform_10(%arg0: i32) -> (i32, i32, i32) {
    %c0_i32 = arith.constant 0 : i32
    %c0_i32_0 = arith.constant 0 : i32
    %c0_i32_1 = arith.constant 0 : i32
    return %arg0, %c0_i32, %c0_i32_0 : i32, i32, i32
  }
  func.func @transform_11(%arg0: i32) -> (i32, i32, i32) {
    %c0_i32 = arith.constant 0 : i32
    %c0_i32_0 = arith.constant 0 : i32
    %c0_i32_1 = arith.constant 0 : i32
    return %arg0, %c0_i32, %c0_i32_0 : i32, i32, i32
  }
  func.func @transform_12(%arg0: i32) -> (i32, i32, i32) {
    %c0_i32 = arith.constant 0 : i32
    %c0_i32_0 = arith.constant 0 : i32
    %c0_i32_1 = arith.constant 0 : i32
    return %arg0, %c0_i32, %c0_i32_0 : i32, i32, i32
  }
  func.func @transform_13(%arg0: i32) -> (i32, i32) {
    %c0_i32 = arith.constant 0 : i32
    %c0_i32_0 = arith.constant 0 : i32
    %c0_i32_1 = arith.constant 0 : i32
    return %c0_i32, %c0_i32_0 : i32, i32
  }
  func.func @transform_14(%arg0: i32) -> (i32, i32) {
    %c0_i32 = arith.constant 0 : i32
    %c0_i32_0 = arith.constant 0 : i32
    %c0_i32_1 = arith.constant 0 : i32
    return %c0_i32, %c0_i32_0 : i32, i32
  }
  func.func @transform_15(%arg0: i32) -> (i32, i32) {
    %c0_i32 = arith.constant 0 : i32
    %c0_i32_0 = arith.constant 0 : i32
    %c0_i32_1 = arith.constant 0 : i32
    return %c0_i32, %c0_i32_0 : i32, i32
  }
  func.func @transform_16(%arg0: i32) -> (i32, i32) {
    %c0_i32 = arith.constant 0 : i32
    %c0_i32_0 = arith.constant 0 : i32
    %c0_i32_1 = arith.constant 0 : i32
    return %c0_i32, %c0_i32_0 : i32, i32
  }
}

</mosaic_0001>

<bundles_post_ra>
// kernel: future_transformer_encoder.1
= control target key start
LH: loop header
LB: loop body
LE: loop exit
PB: predicated region body
PF: predicated region fallthrough
CT: control target
= control target key end

     0   :  { %s4275_s0 = inlined_call_operand.hbm [shape: f32[16,128], index: 0, kind: input, shape index: {}]   ;;  %s4276_s1 = inlined_call_operand.hbm [shape: bf16[2,128,384], index: 1, kind: input, shape index: {}]   ;;  %s4277_s2 = inlined_call_operand.vmem [shape: f32[2,1,384], index: 2, kind: input, shape index: {}]   ;;  %s4278_s3 = inlined_call_operand.hbm [shape: bf16[2,128,128], index: 3, kind: input, shape index: {}]   ;;  %s4279_s4 = inlined_call_operand.vmem [shape: f32[2,1,128], index: 4, kind: input, shape index: {}]   ;;  %s4280_s5 = inlined_call_operand.hbm [shape: bf16[2,128,256], index: 5, kind: input, shape index: {}]   ;;  %s4281_s6 = inlined_call_operand.vmem [shape: f32[2,1,256], index: 6, kind: input, shape index: {}]   ;;  %s4282_s7 = inlined_call_operand.hbm [shape: bf16[2,256,128], index: 7, kind: input, shape index: {}]   ;;  %s4283_s8 = inlined_call_operand.hbm [shape: f32[2,1,128], index: 8, kind: input, shape index: {}]   ;;  %s4284_s9 = inlined_call_operand.vmem [shape: f32[2,1,128], index: 9, kind: input, shape index: {}]   ;;  %s4285_s10 = inlined_call_operand.vmem [shape: f32[2,1,128], index: 10, kind: input, shape index: {}]   ;;  %s4286_s11 = inlined_call_operand.vmem [shape: f32[2,1,128], index: 11, kind: input, shape index: {}]   ;;  %s4287_s12 = inlined_call_operand.vmem [shape: f32[2,1,128], index: 12, kind: input, shape index: {}]   ;;  %s4288_s13 = inlined_call_operand.hbm [shape: bf16[128,128], index: 13, kind: input, shape index: {}]   ;;  %s4289_s14 = inlined_call_operand.vmem [shape: f32[1,128], index: 14, kind: input, shape index: {}]   ;;  %s4290_s15 = inlined_call_operand.hbm [shape: f32[16,128], index: 15, kind: output, shape index: {0}]   ;;  %s4291_s16 = inlined_call_operand.hbm [shape: f32[16,128], index: 16, kind: output, shape index: {1}]  }
   0x1   :  { %4317 = sst [smem:[#allocation28_spill]] %s4275_s0 }
   0x2   :  { %4318 = sst [smem:[#allocation29_spill]] %s4276_s1 }
   0x3   :  { %4319 = sst [smem:[#allocation30_spill]] %s4277_s2 }
   0x4   :  { %4320 = sst [smem:[#allocation31_spill]] %s4278_s3 }
   0x5   :  { %4321 = sst [smem:[#allocation32_spill]] %s4279_s4 }
   0x6   :  { %4322 = sst [smem:[#allocation33_spill]] %s4280_s5 }
   0x7   :  { %4323 = sst [smem:[#allocation34_spill]] %s4281_s6 }
   0x8   :  { %4324 = sst [smem:[#allocation35_spill]] %s4282_s7 }
   0x9   :  { %4325 = sst [smem:[#allocation36_spill]] %s4284_s9 }
   0xa   :  { %4326 = sst [smem:[#allocation37_spill]] %s4285_s10 }
   0xb   :  { %4327 = sst [smem:[#allocation38_spill]] %s4286_s11 }
   0xc   :  { %4328 = sst [smem:[#allocation39_spill]] %s4287_s12 }
   0xd   :  { %4329 = sst [smem:[#allocation40_spill]] %s4288_s13 }
   0xe   :  { %4330 = sst [smem:[#allocation41_spill]] %s4289_s14 }
   0xf   :  { %4331 = sst [smem:[#allocation42_spill]] %s4290_s15 }
  0x10   :  { %4332 = sst [smem:[#allocation43_spill]] %s4291_s16 }
  0x11   :  { %22 = vsyncpa [#allocation3], 0 }
  0x12   :  { %23 = vsyncpa [#allocation6], 0 }
  0x13   :  { %25 = vsyncpa [#allocation6 + $0x1], 0 }
  0x14   :  { %26 = vsyncpa [#allocation9], 0 }
  0x15   :  { %28 = vsyncpa [#allocation9 + $0x1], 0 }
  0x16   :  { %29 = vsyncpa [#allocation12], 0 }
  0x17   :  { %31 = vsyncpa [#allocation12 + $0x1], 0 }
  0x18   :  { %32 = vsyncpa [#allocation4], 0 }
  0x19   :  { %33 = vsyncpa [#allocation16], 0  ;;  %s3580_s21 = smov 0   ;;  %s3582_s22 = smov 0  }
  0x1a   :  { %s3584_s23 = smov 0   ;;  %s3586_s24 = smov 0  }
  0x1b LB: > { %4333 = sst [smem:[#allocation24_spill]] %s3464_s23  ;;  %s3599_s25 = sadd.s32 4294967295, %s3468_s24   ;;  %s3468_s24 = sphi %s3586_s24, %s4390_s24   ;;  %s3464_s23 = sphi %s3584_s23, %s4392_s23   ;;  %s3460_s22 = sphi %s3582_s22, %s4394_s22   ;;  %s3456_s21 = sphi %s3580_s21, %s4393_s21  }
  0x1c   : > { %s3602_s26 = sadd.s32 1, %s3468_s24   ;;  %s67_s28 = sadd.s32 1, %s3464_s23 }
  0x1d   : > { %4334 = sst [smem:[#allocation25_spill]] %s3602_s26  ;;  %s64_s27 = ssub.s32 %s3468_s24, %s3602_s26 }
  0x1e   : > { %p65_p0 = scmp.eq.s32.totalorder %s64_s27, 0  ;;  %p74_p1 = scmp.ne.s32.totalorder %s3464_s23, %s3460_s22 }
  0x1f   : > { %p75_p2 = scmp.eq.s32.totalorder %s3468_s24, 0  ;;  %p80_p3 = scmp.ne.s32.totalorder %s3460_s22, %s3456_s21 }
  0x20   : > { %s3612_s29 = scalar_select %p65_p0, %s3464_s23, %s67_s28  }
  0x21   : > { %p3614_p4 = por %p75_p2, %p74_p1  ;;  %p4298_p5 = scmp.eq.s32.totalorder %s3599_s25, 0 }
  0x22   : > { %4335 = sst [smem:[#allocation26_spill]] %s3612_s29  ;;  %p2590_p6 = scmp.ge.s32.totalorder %s3468_s24, 1 }
  0x23   : > { %s4336_s30 = scalar_select %p3614_p4, 1, 0 }
  0x24   : > { %p461_p7 = scmp.lt.s32.totalorder %s3468_s24, 3  ;;  %p3623_p8 = por %p4298_p5, %p80_p3 }
  0x25   : > { %s3470_s18 = smov [#allocation13]   ;;  %s3642_s21 = sand.u32 1, %s3468_s24  }
  0x26   : > { %s4337_s0 = scalar_select %p3623_p8, 1, 0 }
  0x27   : > { %p3628_p10 = pnand %p2590_p6, %p461_p7  ;;  %s486_s19 = sshll.u32 %s3470_s18, 4  ;;  %s487_s19 = int_to_ptr.vmem [resolvable:$true] %s486_s19 }
  0x28   : > { %4338 = sst [smem:[#allocation27_spill]] %s4337_s0  ;;  %s3645_s27 = sand.u32 1, %s3464_s23  }
  0x29   : > { %s4339_s17 = scalar_select %p3628_p10, 1, 0 }
  0x2a   : > { %p2925_p11 = pneg %p3628_p10  ;;  %s4341_s13 = sld [smem:[#allocation40_spill]] }
  0x2c   : > { %p3636_p12 = pnand %p2925_p11, %p4298_p5 }
  0x2e   : > { %s4340_s20 = scalar_select %p3636_p12, 1, 0 }
  0x2f   : > { %p4305_p1 = pneg %p3636_p12 }
  0x30   : > { %s3152_s26 = scalar_lea.hbm %s4341_s13, 1024 }
  0x31   : > { %p3153_p0 = scmp.ne.s32.totalorder %s4341_s13, %s3152_s26  ;;  %p3159_p6 = scmp.lt.u32.totalorder %s3152_s26, %s4341_s13 }
  0x33   : > { %p3155_p2 = pnand %p4305_p1, %p3153_p0 }
  0x35   : > { %p3156_p3 = pneg %p3155_p2 }
  0x37   : > { %p3161_p7 = pnand %p3159_p6, %p3156_p3 }
  0x39   : > { %3164 = shalt.err (!%p3161_p7)
}
  0x3a   : > { %s3165_s23 = scalar_lea.vmem %s487_s19, 1024  ;;  %p3173_p13 = scmp.lt.s32.totalorder %s487_s19, %s487_s19 }
  0x3b   : > { %p3166_p11 = scmp.ne.s32.totalorder %s487_s19, %s3165_s23  ;;  %p3174_p8 = scmp.lt.s32.totalorder %s3165_s23, %s3165_s23 }
  0x3d   : > { %p3168_p9 = pnand %p3166_p11, %p4305_p1  ;;  %p3175_p10 = por %p3174_p8, %p3173_p13 }
  0x3f   : > { %p3169_p5 = pneg %p3168_p9 }
  0x41   : > { %p3176_p4 = pnand %p3175_p10, %p3169_p5 }
  0x43   : > { %3179 = shalt.err (!%p3176_p4)
}
  0x44   : > { %s4301_s16 = smov 64   ;;  %s4303_s14 = smov 4  }
  0x45   : > { %2931 = dma.hbm_to_vmem [thread:$0]  (!%p3636_p12), %s4341_s13, 1024, %s487_s19, [#allocation12], %s4301_s16, %s4301_s16, %s4303_s14  }
  0x46   : > { %s2895_s23 = smul.u32 192, %s3645_s27  ;;  %p4342_p8 = scmp.ne.s32.totalorder %s4336_s30, 0 }
  0x47   : > { %p4343_p5 = scmp.lt.s32.totalorder %s3468_s24, 2  ;;  %s2896_s28 = smul.u32 3072, %s3468_s24 }
  0x48   : > { %s4345_s1 = sld [smem:[#allocation29_spill]]  ;;  %s507_s15 = scalar_lea.vmem [#allocation5], %s2895_s23 }
  0x49   : > { %p3677_p4 = pnand %p4343_p5, %p4342_p8  ;;  %s514_s19 = sshll.u32 %s507_s15, 4  ;;  %s3687_s19 = int_to_ptr.vmem [resolvable:$true] %s514_s19 }
  0x4a   : > { %s4308_s30 = scalar_lea.sflag [#allocation6], %s3642_s21 }
  0x4b   : > { %s4344_s29 = scalar_select %p3677_p4, 1, 0 }
  0x4c   : > { %p3694_p10 = pneg %p3677_p4 }
  0x4e   : > { %s3685_s11 = scalar_lea.hbm %s4345_s1, %s2896_s28  ;;  %s3185_s18 = scalar_lea.hbm %s4345_s1, 6144 }
  0x4f   : > { %s3180_s26 = scalar_lea.hbm %s3685_s11, 3072  ;;  %p3186_p2 = scmp.lt.u32.totalorder %s3685_s11, %s4345_s1 }
  0x50   : > { %p3181_p9 = scmp.ne.s32.totalorder %s3685_s11, %s3180_s26  ;;  %p3187_p3 = scmp.lt.u32.totalorder %s3185_s18, %s3180_s26 }
  0x51   : > { %s4346_s16 = scalar_select %p3694_p10, 1, 0 }
  0x52   : > { %p3183_p13 = pnand %p3694_p10, %p3181_p9  ;;  %p3188_p6 = por %p3187_p3, %p3186_p2 }
  0x53   : > { %p3189_p7 = scmp.lt.u32.totalorder %s3180_s26, %s3685_s11 }
  0x54   : > { %p3184_p0 = pneg %p3183_p13 }
  0x55   : > { %p3190_p11 = por %p3189_p7, %p3188_p6 }
  0x57   : > { %p3191_p8 = pnand %p3190_p11, %p3184_p0 }
  0x59   : > { %3194 = shalt.err (!%p3191_p8)
}
  0x5a   : > { %s3195_s14 = scalar_lea.vmem %s3687_s19, 3072  ;;  %s3473_s12 = smov [#allocation5]  }
  0x5b   : > { %p3196_p5 = scmp.ne.s32.totalorder %s3687_s19, %s3195_s14  ;;  %s3200_s28 = sshll.u32 %s3473_s12, 4  ;;  %s3201_s28 = int_to_ptr.vmem [resolvable:$false] %s3200_s28 }
  0x5c   : > { %s3202_s23 = scalar_lea.vmem %s3201_s28, 6144  ;;  %p3203_p1 = scmp.lt.s32.totalorder %s3687_s19, %s3201_s28 }
  0x5d   : > { %p3198_p9 = pnand %p3196_p5, %p3694_p10  ;;  %p3204_p12 = scmp.lt.s32.totalorder %s3202_s23, %s3195_s14 }
  0x5f   : > { %p3199_p13 = pneg %p3198_p9  ;;  %p3205_p2 = por %p3204_p12, %p3203_p1 }
  0x61   : > { %p3206_p3 = pnand %p3205_p2, %p3199_p13 }
  0x63   : > { %3209 = shalt.err (!%p3206_p3)
}
  0x64   : > { %s3474_s26 = smov 192   ;;  %s3475_s18 = smov 12  }
  0x65   : > { %2935 = dma.hbm_to_vmem [thread:$0]  (!%p3677_p4), %s3685_s11, 3072, %s3687_s19, %s4308_s30, %s3474_s26, %s3474_s26, %s3475_s18  }
  0x66   : > { %s2598_s15 = sshll.u32 %s3645_s27, 7  ;;  %s2708_s14 = sshll.u32 %s3468_s24, 11 }
  0x67   : > { %s4347_s5 = sld [smem:[#allocation33_spill]]  ;;  %s562_s1 = scalar_lea.vmem [#allocation8], %s2598_s15 }
  0x68   : > { %s569_s13 = sshll.u32 %s562_s1, 4  ;;  %s559_s10 = scalar_lea.sflag [#allocation9], %s3642_s21  ;;  %s3730_s13 = int_to_ptr.vmem [resolvable:$true] %s569_s13 }
  0x6d   : > { %s3726_s23 = scalar_lea.hbm %s4347_s5, %s2708_s14  ;;  %s3215_s26 = scalar_lea.hbm %s4347_s5, 4096 }
  0x6e   : > { %s3210_s6 = scalar_lea.hbm %s3726_s23, 2048  ;;  %p3216_p6 = scmp.lt.u32.totalorder %s3726_s23, %s4347_s5 }
  0x6f   : > { %p3211_p12 = scmp.ne.s32.totalorder %s3726_s23, %s3210_s6  ;;  %p3217_p7 = scmp.lt.u32.totalorder %s3215_s26, %s3210_s6 }
  0x70   : > { %p3219_p8 = scmp.lt.u32.totalorder %s3210_s6, %s3726_s23 }
  0x71   : > { %p3213_p1 = pnand %p3211_p12, %p3694_p10  ;;  %p3218_p11 = por %p3217_p7, %p3216_p6 }
  0x73   : > { %p3214_p0 = pneg %p3213_p1  ;;  %p3220_p5 = por %p3219_p8, %p3218_p11 }
  0x75   : > { %p3221_p9 = pnand %p3220_p5, %p3214_p0 }
  0x77   : > { %3224 = shalt.err (!%p3221_p9)
}
  0x78   : > { %s3225_s1 = scalar_lea.vmem %s3730_s13, 2048  ;;  %s3476_s28 = smov [#allocation8]  }
  0x79   : > { %p3226_p13 = scmp.ne.s32.totalorder %s3730_s13, %s3225_s1  ;;  %s3230_s11 = sshll.u32 %s3476_s28, 4  ;;  %s3231_s11 = int_to_ptr.vmem [resolvable:$false] %s3230_s11 }
  0x7a   : > { %s3232_s19 = scalar_lea.vmem %s3231_s11, 4096  ;;  %p3233_p12 = scmp.lt.s32.totalorder %s3730_s13, %s3231_s11 }
  0x7b   : > { %p3228_p2 = pnand %p3226_p13, %p3694_p10  ;;  %p3234_p1 = scmp.lt.s32.totalorder %s3232_s19, %s3225_s1 }
  0x7d   : > { %p3229_p3 = pneg %p3228_p2  ;;  %p3235_p6 = por %p3234_p1, %p3233_p12 }
  0x7f   : > { %p3236_p7 = pnand %p3235_p6, %p3229_p3 }
  0x81   : > { %3239 = shalt.err (!%p3236_p7)
}
  0x82   : > { %s3477_s6 = smov 128   ;;  %s3478_s26 = smov 8  }
  0x83   : > { %2941 = dma.hbm_to_vmem [thread:$0]  (!%p3677_p4), %s3726_s23, 2048, %s3730_s13, %s559_s10, %s3477_s6, %s3477_s6, %s3478_s26  }
  0x84   : > { %s4348_s7 = sld [smem:[#allocation35_spill]]  ;;  %s590_s28 = scalar_lea.vmem [#allocation10], %s2598_s15 }
  0x85   : > { %s597_s11 = sshll.u32 %s590_s28, 4  ;;  %s3479_s19 = smov [#allocation2]   ;;  %s3768_s11 = int_to_ptr.vmem [resolvable:$true] %s597_s11 }
  0x86   : > { %s473_s30 = sshll.u32 %s3479_s19, 4  ;;  %s2595_s5 = sshll.u32 %s3645_s27, 6  ;;  %s474_s30 = int_to_ptr.vmem [resolvable:$true] %s473_s30 }
  0x87   : > { %s4349_s4 = sld [smem:[#allocation28_spill]]  ;;  %p4350_p11 = scmp.ne.s32.totalorder %s4340_s20, 0 }
  0x89   : > { %p4351_p8 = pneg %p4350_p11 }
  0x8a   : > { %s3764_s1 = scalar_lea.hbm %s4348_s7, %s2708_s14 }
  0x8d   : > { %s3240_s0 = scalar_lea.hbm %s4349_s4, 256 }
  0x8e   : > { %p3241_p0 = scmp.ne.s32.totalorder %s4349_s4, %s3240_s0  ;;  %p3247_p13 = scmp.lt.u32.totalorder %s3240_s0, %s4349_s4 }
  0x90   : > { %p3243_p5 = pnand %p3241_p0, %p4351_p8 }
  0x92   : > { %p3244_p9 = pneg %p3243_p5 }
  0x94   : > { %p3249_p2 = pnand %p3247_p13, %p3244_p9 }
  0x96   : > { %3252 = shalt.err (!%p3249_p2)
}
  0x97   : > { %s3253_s18 = scalar_lea.vmem %s474_s30, 256  ;;  %p4352_p12 = pmov %p4351_p8 }
  0x98   : > { %p3254_p3 = scmp.ne.s32.totalorder %s474_s30, %s3253_s18  ;;  %p3261_p7 = scmp.lt.s32.totalorder %s474_s30, %s474_s30 }
  0x99   : > { %p3262_p4 = scmp.lt.s32.totalorder %s3253_s18, %s3253_s18 }
  0x9a   : > { %p3256_p1 = pnand %p3254_p3, %p4352_p12 }
  0x9b   : > { %p3263_p10 = por %p3262_p4, %p3261_p7 }
  0x9c   : > { %p3257_p6 = pneg %p3256_p1 }
  0x9e   : > { %p3264_p0 = pnand %p3263_p10, %p3257_p6 }
  0xa0   : > { %3267 = shalt.err (!%p3264_p0)
}
  0xa1   : > { %2928 = dma.hbm_to_vmem [thread:$0]  (!%p4350_p11), %s4349_s4, 256, %s474_s30, [#allocation3], %s3477_s6, %s3477_s6, %s3478_s26  }
  0xa2   : > { %s2707_s0 = sshll.u32 %s3468_s24, 10  ;;  %s535_s12 = scalar_lea.vmem [#allocation7], %s2595_s5 }
  0xa3   : > { %s542_s28 = sshll.u32 %s535_s12, 4  ;;  %s4353_s3 = sld [smem:[#allocation31_spill]]  ;;  %s3800_s28 = int_to_ptr.vmem [resolvable:$true] %s542_s28 }
  0xa4   : > { %p4354_p10 = scmp.ne.s32.totalorder %s4346_s16, 0 }
  0xa9   : > { %s3798_s23 = scalar_lea.hbm %s4353_s3, %s2707_s0  ;;  %s3273_s5 = scalar_lea.hbm %s4353_s3, 2048 }
  0xaa   : > { %s3268_s20 = scalar_lea.hbm %s3798_s23, 1024  ;;  %p3274_p11 = scmp.lt.u32.totalorder %s3798_s23, %s4353_s3 }
  0xab   : > { %p3269_p4 = scmp.ne.s32.totalorder %s3798_s23, %s3268_s20  ;;  %p3275_p9 = scmp.lt.u32.totalorder %s3273_s5, %s3268_s20 }
  0xac   : > { %p3277_p2 = scmp.lt.u32.totalorder %s3268_s20, %s3798_s23 }
  0xad   : > { %p3271_p8 = pnand %p3269_p4, %p4354_p10  ;;  %p3276_p13 = por %p3275_p9, %p3274_p11 }
  0xaf   : > { %p3272_p5 = pneg %p3271_p8  ;;  %p3278_p3 = por %p3277_p2, %p3276_p13 }
  0xb1   : > { %p3279_p12 = pnand %p3278_p3, %p3272_p5 }
  0xb3   : > { %3282 = shalt.err (!%p3279_p12)
}
  0xb4   : > { %s3283_s14 = scalar_lea.vmem %s3800_s28, 1024  ;;  %s3480_s18 = smov [#allocation7]  }
  0xb5   : > { %p3284_p1 = scmp.ne.s32.totalorder %s3800_s28, %s3283_s14  ;;  %s3288_s2 = sshll.u32 %s3480_s18, 4  ;;  %s3289_s2 = int_to_ptr.vmem [resolvable:$false] %s3288_s2 }
  0xb6   : > { %s3290_s9 = scalar_lea.vmem %s3289_s2, 2048  ;;  %p3291_p0 = scmp.lt.s32.totalorder %s3800_s28, %s3289_s2 }
  0xb7   : > { %p3286_p6 = pnand %p3284_p1, %p4354_p10  ;;  %p3292_p4 = scmp.lt.s32.totalorder %s3290_s9, %s3283_s14 }
  0xb9   : > { %p3287_p7 = pneg %p3286_p6  ;;  %p3293_p8 = por %p3292_p4, %p3291_p0 }
  0xbb   : > { %p3294_p11 = pnand %p3293_p8, %p3287_p7 }
  0xbd   : > { %3297 = shalt.err (!%p3294_p11)
}
  0xbe   : > { %p4355_p5 = scmp.ne.s32.totalorder %s4344_s29, 0  ;;  %s4356_s0 = smov 4  }
  0xbf   : > { %s4357_s12 = smov 64   ;;  %s4358_s19 = scalar_lea.sflag [#allocation6], %s3642_s21 }
  0xc0   : > { %2938 = dma.hbm_to_vmem [thread:$0]  (!%p4355_p5), %s3798_s23, 1024, %s3800_s28, %s4358_s19, %s4357_s12, %s4357_s12, %s4356_s0  }
  0xc1   : > { %s3298_s13 = scalar_lea.hbm %s3764_s1, 2048  ;;  %s3303_s6 = scalar_lea.hbm %s4348_s7, 4096 }
  0xc2   : > { %p3299_p9 = scmp.ne.s32.totalorder %s3764_s1, %s3298_s13  ;;  %p3304_p3 = scmp.lt.u32.totalorder %s3764_s1, %s4348_s7 }
  0xc3   : > { %p3305_p12 = scmp.lt.u32.totalorder %s3303_s6, %s3298_s13  ;;  %p3307_p6 = scmp.lt.u32.totalorder %s3298_s13, %s3764_s1 }
  0xc4   : > { %p3301_p13 = pnand %p3299_p9, %p4354_p10 }
  0xc5   : > { %p3306_p1 = por %p3305_p12, %p3304_p3 }
  0xc6   : > { %p3302_p2 = pneg %p3301_p13 }
  0xc7   : > { %p3308_p7 = por %p3307_p6, %p3306_p1 }
  0xc9   : > { %p3309_p0 = pnand %p3308_p7, %p3302_p2 }
  0xcb   : > { %3312 = shalt.err (!%p3309_p0)
}
  0xcc   : > { %s3313_s28 = scalar_lea.vmem %s3768_s11, 2048  ;;  %s3481_s23 = smov [#allocation10]  }
  0xcd   : > { %p3314_p4 = scmp.ne.s32.totalorder %s3768_s11, %s3313_s28  ;;  %s3318_s15 = sshll.u32 %s3481_s23, 4  ;;  %s3319_s15 = int_to_ptr.vmem [resolvable:$false] %s3318_s15 }
  0xce   : > { %s3320_s14 = scalar_lea.vmem %s3319_s15, 4096  ;;  %p3321_p9 = scmp.lt.s32.totalorder %s3768_s11, %s3319_s15 }
  0xcf   : > { %p3316_p8 = pnand %p3314_p4, %p4354_p10  ;;  %p3322_p13 = scmp.lt.s32.totalorder %s3320_s14, %s3313_s28 }
  0xd1   : > { %p3317_p11 = pneg %p3316_p8  ;;  %p3323_p3 = por %p3322_p13, %p3321_p9 }
  0xd3   : > { %p3324_p12 = pnand %p3323_p3, %p3317_p11 }
  0xd5   : > { %3327 = shalt.err (!%p3324_p12)
}
  0xd6   : > { %2944 = dma.hbm_to_vmem [thread:$0]  (!%p4355_p5), %s3764_s1, 2048, %s3768_s11, %s559_s10, %s4357_s12, %s4357_s12, %s4356_s0  }
  0xd7   : > { %s2604_s18 = sshll.u32 %s3468_s24, 4  ;;  %s610_s2 = scalar_lea.vmem [#allocation11], %s3645_s27 }
  0xd8   : > { %s617_s9 = sshll.u32 %s610_s2, 4  ;;  %s3859_s20 = scalar_lea.hbm %s4283_s8, %s2604_s18  ;;  %s618_s9 = int_to_ptr.vmem [resolvable:$true] %s617_s9 }
  0xd9   : > { %s608_s30 = scalar_lea.sflag [#allocation12], %s3642_s21  ;;  %s3328_s6 = scalar_lea.hbm %s3859_s20, 16 }
  0xda   : > { %p3329_p2 = scmp.ne.s32.totalorder %s3859_s20, %s3328_s6  ;;  %s3333_s27 = scalar_lea.hbm %s4283_s8, 32 }
  0xdb   : > { %p3334_p7 = scmp.lt.u32.totalorder %s3859_s20, %s4283_s8  ;;  %p3335_p0 = scmp.lt.u32.totalorder %s3333_s27, %s3328_s6 }
  0xdc   : > { %p3331_p1 = pnand %p3329_p2, %p4354_p10  ;;  %p3337_p8 = scmp.lt.u32.totalorder %s3328_s6, %s3859_s20 }
  0xdd   : > { %p3336_p4 = por %p3335_p0, %p3334_p7 }
  0xde   : > { %p3332_p6 = pneg %p3331_p1 }
  0xdf   : > { %p3338_p11 = por %p3337_p8, %p3336_p4 }
  0xe1   : > { %p3339_p9 = pnand %p3338_p11, %p3332_p6 }
  0xe3   : > { %3342 = shalt.err (!%p3339_p9)
}
  0xe4   : > { %s3343_s21 = scalar_lea.vmem %s618_s9, 16  ;;  %s3482_s0 = smov [#allocation11]  }
  0xe5   : > { %p3344_p13 = scmp.ne.s32.totalorder %s618_s9, %s3343_s21  ;;  %s3348_s12 = sshll.u32 %s3482_s0, 4  ;;  %s3349_s12 = int_to_ptr.vmem [resolvable:$false] %s3348_s12 }
  0xe6   : > { %s3350_s5 = scalar_lea.vmem %s3349_s12, 32  ;;  %p3351_p2 = scmp.lt.s32.totalorder %s618_s9, %s3349_s12 }
  0xe7   : > { %p3346_p3 = pnand %p3344_p13, %p4354_p10  ;;  %p3352_p1 = scmp.lt.s32.totalorder %s3350_s5, %s3343_s21 }
  0xe9   : > { %p3347_p12 = pneg %p3346_p3  ;;  %p3353_p5 = por %p3352_p1, %p3351_p2 }
  0xeb   : > { %p3354_p0 = pnand %p3353_p5, %p3347_p12 }
  0xed   : > { %3357 = shalt.err (!%p3354_p0)
}
  0xee   : > { %p4359_p7 = scmp.ne.s32.totalorder %s4344_s29, 0  ;;  %p4360_p6 = scmp.ne.s32.totalorder %s4339_s17, 0 }
  0xef   : > { %p4361_p4 = scmp.eq.s32.totalorder (!%p4360_p6), %s3599_s25, 0 }
  0xf0   : > { %2947 = dma.hbm_to_vmem [thread:$0]  (!%p4359_p7), %s3859_s20, 16, %s618_s9, %s608_s30  }
  0xf1   : > { %650 = sbr.rel (%p4360_p6) target bundleno = 3415 (0xd57), region = 80 }
  0xf8   : > { %3427 = dma.done.wait (%p4361_p4), [#allocation3], 256   ;;  %p4362_p10 = pmov %p4361_p4 }
  0xf9   : > { %s4363_s16 = sld [smem:[#allocation27_spill]]  ;;  %s656_s26 = sand.u32 1, %s3599_s25  }
  0xfa   : > { %3429 = vsyncadd (%p4362_p10), [#allocation3], 4294967040  ;;  %s3887_s28 = sand.u32 1, %s3460_s22   ;;  %s657_s29 = scalar_lea.sflag [#allocation6], %s656_s26 }
  0xfb   : > { %s2897_s23 = smul.u32 192, %s3887_s28 }
  0xfd   : > { %s3890_s15 = scalar_lea.vmem [#allocation5], %s2897_s23 }
  0xff   : > { %p4364_p5 = scmp.ne.s32.totalorder %s4363_s16, 0 }
 0x101   : > { %3431 = dma.done.wait (%p4364_p5), %s657_s29, 4096  }
 0x102   : > { %3433 = vsyncadd (%p4364_p5), %s657_s29, 4294963200  ;;  %s2607_s17 = sshll.u32 %s3887_s28, 6  ;;  %s2608_s14 = sshll.u32 %s3887_s28, 7 }
 0x103   : > { %s3898_s18 = scalar_lea.vmem [#allocation7], %s2607_s17  ;;  %s675_s2 = scalar_lea.sflag [#allocation9], %s656_s26 }
 0x104   : > { %s3900_s9 = scalar_lea.vmem [#allocation8], %s2608_s14 }
 0x105   : > { %3435 = dma.done.wait (%p4364_p5), %s675_s2, 4096  }
 0x106   : > { %3437 = vsyncadd (%p4364_p5), %s675_s2, 4294963200  ;;  %s3906_s19 = scalar_lea.vmem [#allocation10], %s2608_s14  ;;  %s693_s13 = scalar_lea.sflag [#allocation12], %s656_s26 }
 0x107   : > { %3439 = dma.done.wait (%p4364_p5), %s693_s13, 16  }
 0x108   : > { %3441 = vsyncadd (%p4364_p5), %s693_s13, 4294967280  ;;  %p4365_p8 = pmov %p4361_p4 }
 0x109   : > { %p4366_p11 = pmov %p4361_p4 }
 0x10a   : > { %3443 = dma.done.wait (%p4365_p8), [#allocation12], 1024  }
 0x10b   : > { %3445 = vsyncadd (%p4366_p11), [#allocation12], 4294966272  ;;  %p785_p9 = scmp.lt.s32.totalorder %s3599_s25, 1  ;;  %s4369_s23 = sld [smem:[#allocation30_spill]] }
 0x10c   : > { %s4370_s2 = sld [smem:[#allocation34_spill]]  ;;  %s4371_s4 = sld [smem:[#allocation37_spill]] }
 0x10d   : > { %s3919_s30 = scalar_select %p785_p9, %s3599_s25, 1 }
 0x10e   : > { %s4372_s1 = sld [smem:[#allocation38_spill]]  ;;  %s4373_s12 = sld [smem:[#allocation39_spill]] }
 0x10f   : > { %s2898_s6 = smul.u32 3, %s3919_s30  ;;  %s2611_s11 = sshll.u32 %s3919_s30, 1 }
 0x110   : > { %p4374_p13 = scmp.ne.s32.totalorder %s3599_s25, 0 }
 0x111   : > { %s3934_s29 = scalar_lea.vmem %s4369_s23, %s2898_s6  ;;  %v813_v0 = vld [vmem:[#allocation2] sm:$0xff] (!%p4374_p13)  ;;  %v814_v1 = vld [vmem:[#allocation2 + $0x8] sm:$0xff] (!%p4374_p13) }
 0x112   : > { %s3939_s13 = scalar_lea.vmem %s4370_s2, %s2611_s11  ;;  %s801_s10 = scalar_lea.vmem %s4371_s4, %s3919_s30  ;;  %815 = vst [vmem:[#allocation15] sm:$0xff] (!%p4374_p13), %v813_v0  ;;  %816 = vst [vmem:[#allocation15 + $0x8] sm:$0xff] (!%p4374_p13), %v814_v1 }
 0x113   : > { %812 = sbr.rel (%p4374_p13) target bundleno = 282 (0x11a), region = 112 }
 0x114   : > { %s804_s7 = scalar_lea.vmem %s4372_s1, %s3919_s30  ;;  %s807_s5 = scalar_lea.vmem %s4373_s12, %s3919_s30 }
 0x11a PF: > { %v3024_v2 = vld [vmem:[%s3890_s15 + $0x4] ss:$12 sps:$4 sm:$0xff]   ;;  %v3026_v3 = vld [vmem:[%s3890_s15] ss:$12 sps:$4 sm:$0xff]   ;;  %v3483_v4 = vmov 0   ;;  %v3484_v23 = vmov 0.0   ;;  %v854_v30 = vlaneseq }
 0x11b   : > { %1029 = vmatprep.mubr.bf16.mxu0 %v3483_v4  ;;  %997 = vmatprep.subr.bf16.mxu0 %v3024_v2  ;;  %v3027_v5 = vld [vmem:[%s3890_s15 + $0x1c] ss:$12 sps:$4 sm:$0xff]   ;;  %v3029_v6 = vld [vmem:[%s3890_s15 + $0x18] ss:$12 sps:$4 sm:$0xff]   ;;  %v3030_v7 = vld [vmem:[%s3890_s15 + $0x34] ss:$12 sps:$4 sm:$0xff]  }
 0x11c   : > { %998 = vmatpush1.bf16.msra.mxu0 %v3026_v3  ;;  %v3032_v8 = vld [vmem:[%s3890_s15 + $0x30] ss:$12 sps:$4 sm:$0xff]   ;;  %v3033_v9 = vld [vmem:[%s3890_s15 + $0x4c] ss:$12 sps:$4 sm:$0xff]   ;;  %v3035_v10 = vld [vmem:[%s3890_s15 + $0x48] ss:$12 sps:$4 sm:$0xff]   ;;  %2779 = vmatprep.subr.bf16.mxu1 %v3484_v23 }
 0x11d   : > { %999 = vmatprep.subr.bf16.mxu0 %v3027_v5  ;;  %v3036_v11 = vld [vmem:[%s3890_s15 + $0x64] ss:$12 sps:$4 sm:$0xff]   ;;  %v3038_v12 = vld [vmem:[%s3890_s15 + $0x60] ss:$12 sps:$4 sm:$0xff]   ;;  %v3039_v13 = vld [vmem:[%s3890_s15 + $0x7c] ss:$12 sps:$4 sm:$0xff]  }
 0x11e   : > { %v3041_v14 = vld [vmem:[%s3890_s15 + $0x78] ss:$12 sps:$4 sm:$0xff]   ;;  %v3042_v15 = vld [vmem:[%s3890_s15 + $0x94] ss:$12 sps:$4 sm:$0xff]   ;;  %v3044_v16 = vld [vmem:[%s3890_s15 + $0x90] ss:$12 sps:$4 sm:$0xff]  }
 0x11f   : > { %v3045_v17 = vld [vmem:[%s3890_s15 + $0xac] ss:$12 sps:$4 sm:$0xff]   ;;  %v3047_v18 = vld [vmem:[%s3890_s15 + $0xa8] ss:$12 sps:$4 sm:$0xff]   ;;  %v3051_v26 = vld [vmem:[%s3890_s15 + $0x50] ss:$12 sps:$4 sm:$0xff]  }
 0x120   : > { %1000 = vmatpush1.bf16.msra.mxu0 %v3029_v6  ;;  %v3972_v19 = vld [vmem:[#allocation15] sm:$0xff]  ;;  %v3974_v20 = vld [vmem:[#allocation15 + $0x8] sm:$0xff]  ;;  %v3994_v31 = vshrl.u32 %v854_v30, 7  ;;  %vm3485_vm0 = vmmov 0   ;;  %vm1166_vm1 = vcmask 261120   ;;  %v1151_v62 = vand.u32 127, %v854_v30 }
 0x121   : > { %1001 = vmatprep.subr.bf16.mxu0 %v3030_v7  ;;  %v819_v21 = vpack.c.bf16 %v3974_v20, %v3972_v19  ;;  %v3048_v22 = vld [vmem:[%s3890_s15 + $0x8] ss:$12 sps:$4 sm:$0xff]   ;;  %v3049_v24 = vld [vmem:[%s3890_s15 + $0x20] ss:$12 sps:$4 sm:$0xff]   ;;  %v3050_v25 = vld [vmem:[%s3890_s15 + $0x38] ss:$12 sps:$4 sm:$0xff]   ;;  %2795 = vmatprep.mubr.msk.bf16.mxu1 %vm3485_vm0, %v3484_v23 }
 0x122   : > { %2780 = vmatpush3.bf16.msra.mxu1 %v3048_v22  ;;  %v3052_v27 = vld [vmem:[%s3890_s15 + $0x68] ss:$12 sps:$4 sm:$0xff]   ;;  %v3053_v28 = vld [vmem:[%s3890_s15 + $0x80] ss:$12 sps:$4 sm:$0xff]   ;;  %v3054_v29 = vld [vmem:[%s3890_s15 + $0x98] ss:$12 sps:$4 sm:$0xff]  }
 0x123   : > { %2781 = vmatprep.subr.bf16.mxu1 %v3484_v23  ;;  %v860_v32 = vsub.s32 1, %v3994_v31  ;;  %v852_v33 = vld [vmem:[%s3934_s29] sm:$0x7]  ;;  %v856_v34 = vsub.s32 0, %v3994_v31  ;;  %v864_v53 = vsub.s32 2, %v3994_v31  ;;  %v1125_v63 = vadd.s32 8, %v3994_v31 }
 0x124   : > { %1002 = vmatpush1.bf16.msra.mxu0 %v3032_v8  ;;  %v3055_v44 = vld [vmem:[%s3890_s15 + $0xb0] ss:$12 sps:$4 sm:$0xff]   ;;  %v1130_v0 = vand.u32 1, %v3994_v31  ;;  %v1156_v1 = vand.u32 1, %v1151_v62  ;;  %vm1213_vm3 = vcmask 130048   ;;  %s3486_s3 = smov 96  }
 0x125   : > { %1003 = vmatprep.subr.bf16.mxu0 %v3033_v9  ;;  %v861_v35 = vrot.slane %v852_v33, %v860_v32  ;;  %v857_v36 = vrot.slane %v852_v33, %v856_v34  ;;  %v865_v54 = vrot.slane %v852_v33, %v864_v53  ;;  %v1137_v2 = vand.u32 1, %v1125_v63  ;;  %s3487_s4 = smov 64   ;;  %s3488_s15 = smov 32  }
 0x126   : > { %2782 = vmatpush3.bf16.msra.mxu1 %v3049_v24  ;;  %vm4026_vm2 = vcmp.eq.s32.totalorder %v1130_v0, %v1156_v1  ;;  %vm1663_vm5 = vcmask 523264   ;;  %vm1666_vm6 = vcmask 785408   ;;  %s4379_s6 = sld [smem:[#allocation32_spill]]  ;;  %s4381_s16 = sld [smem:[#allocation36_spill]] }
 0x127   : > { %2783 = vmatprep.subr.bf16.mxu1 %v3484_v23  ;;  %vm4030_vm4 = vcmp.eq.s32.totalorder %v1137_v2, %v1156_v1  ;;  %p2691_p3 = scmp.ne.s32.totalorder %s3599_s25, 1 }
 0x128   : > { %1004 = vmatpush1.bf16.msra.mxu0 %v3035_v10  ;;  %vm3490_vm7 = vmmov (!%p2691_p3), 0  }
 0x129   : > { %1005 = vmatprep.subr.bf16.mxu0 %v3036_v11 }
 0x12a   : > { %2784 = vmatpush3.bf16.msra.mxu1 %v3050_v25 }
 0x12b   : > { %2785 = vmatprep.subr.bf16.mxu1 %v3484_v23 }
 0x12c   : > { %1006 = vmatpush1.bf16.msra.mxu0 %v3038_v12  ;;  %s4380_s1 = scalar_lea.vmem %s4379_s6, %s3919_s30  ;;  %s4382_s26 = scalar_lea.vmem %s4381_s16, %s3919_s30 }
 0x12d   : > { %1007 = vmatprep.subr.bf16.mxu0 %v3039_v13 }
 0x12e   : > { %2786 = vmatpush3.bf16.msra.mxu1 %v3051_v26 }
 0x12f   : > { %2787 = vmatprep.subr.bf16.mxu1 %v3484_v23 }
 0x130   : > { %1008 = vmatpush1.bf16.msra.mxu0 %v3041_v14 }
 0x131   : > { %1009 = vmatprep.subr.bf16.mxu0 %v3042_v15 }
 0x132   : > { %2788 = vmatpush3.bf16.msra.mxu1 %v3052_v27 }
 0x133   : > { %2789 = vmatprep.subr.bf16.mxu1 %v3484_v23 }
 0x134   : > { %1010 = vmatpush1.bf16.msra.mxu0 %v3044_v16 }
 0x135   : > { %1011 = vmatprep.subr.bf16.mxu0 %v3045_v17 }
 0x136   : > { %2790 = vmatpush3.bf16.msra.mxu1 %v3053_v28 }
 0x137   : > { %2791 = vmatprep.subr.bf16.mxu1 %v3484_v23 }
 0x138   : > { %1012 = vmatpush1.bf16.msra.mxu0 %v3047_v18 }
 0x139   : > { %2827 = vmatprep.subr.bf16.mxu0 %v3484_v23 }
 0x13a   : > { %2792 = vmatpush3.bf16.msra.mxu1 %v3054_v29 }
 0x13b   : > { %1030 = vmatmul.mubr.bf16.vlgmr.msra.gmra.mrb[0].mxu0 %v819_v21  ;;  %2793 = vmatprep.subr.bf16.mxu1 %v3484_v23 }
 0x13c   : > { %2831 = vmatprep.mubr.msk.bf16.mxu0 %vm3485_vm0, %v3484_v23 }
 0x13e   : > { %2794 = vmatpush3.bf16.msra.mxu1 %v3055_v44 }
 0x13f   : > { %2799 = vmatprep.subr.bf16.mxu1 %v3484_v23 }
 0x141   : > { %2796 = vmatmul.mubr.bf16.vlgmr.msra.gmra.mrb[0].mxu1 %v819_v21 }
 0x142   : > { %2803 = vmatprep.mubr.msk.bf16.mxu1 %vm3485_vm0, %v3484_v23 }
 0x20e   : > { %v1031_v37 = vpop.f32.mrb[0].mxu0 }
 0x20f   : > { %v1033_v38 = vpop.f32.mrb[1].mxu0  ;;  %v1032_v41 = vadd.f32 %v1031_v37, %v857_v36 }
 0x210   : > { %v1035_v39 = vpop.f32.mrb[2].mxu0  ;;  %v1034_v40 = vadd.f32 %v1033_v38, %v861_v35 }
 0x211   : > { %v1036_v42 = vadd.f32 %v1035_v39, %v857_v36  ;;  %v1037_v43 = vpop.f32.mrb[3].mxu0 }
 0x212   : > { %1082 = vxpose.xlu0.b32.start [1/2] (short) %v1034_v40, 128  ;;  %v1038_v46 = vadd.f32 %v1037_v43, %v861_v35 }
 0x213   : > { %v4004_v45 = vpack.c.bf16 %v1036_v42, %v1032_v41 }
 0x214   : > { %v1074_v55 = vpop.f32.mrb[0].mxu1 }
 0x215   : > { %v1075_v56 = vadd.f32 %v1074_v55, %v865_v54  ;;  %v2797_v57 = vpop.f32.mrb[1].mxu1 }
 0x216   : > { %1083 = vxpose.xlu0.b32.end [2/2] (short) %v1038_v46, 128  ;;  %v1077_v58 = vpop.f32.mrb[2].mxu1 }
 0x217   : > { %v1078_v59 = vadd.f32 %v1077_v58, %v865_v54  ;;  %v2798_v60 = vpop.f32.mrb[3].mxu1 }
 0x219   : > { %v4020_v61 = vpack.c.bf16 %v1078_v59, %v1075_v56 }
 0x292   : > { %v1098_v47 = vpop.trf.xlu0 }
 0x296   : > { %v1099_v48 = vpop.trf.xlu0 }
 0x297   : > { %v1114_v49 = vpack.c.bf16 %v1099_v48, %v1098_v47 }
 0x299   : > { %2800 = vmatpush3.bf16.msra.mxu1 %v1114_v49 }
 0x29a   : > { %v1100_v50 = vpop.trf.xlu0  ;;  %2801 = vmatprep.subr.bf16.mxu1 %v3484_v23 }
 0x29e   : > { %v1101_v51 = vpop.trf.xlu0 }
 0x29f   : > { %v1115_v52 = vpack.c.bf16 %v1101_v51, %v1100_v50 }
 0x2a1   : > { %2802 = vmatpush3.bf16.msra.mxu1 %v1115_v52 }
 0x2a2   : > { %2807 = vmatprep.subr.bf16.mxu1 %v3484_v23  ;;  %v1102_v14 = vpop.trf.xlu0 }
 0x2a4   : > { %2804 = vmatmul.mubr.msk.bf16.vlgmr.msra.gmra.mrb[4].mxu1 %vm1166_vm1, %v4004_v45 }
 0x2a5   : > { %2809 = vmatprep.mubr.msk.bf16.mxu1 %vm3485_vm0, %v3484_v23  ;;  %2808 = vmatpush3.bf16.msra.mxu1 %v4020_v61 }
 0x2a6   : > { %2813 = vmatprep.subr.bf16.mxu1 %v3484_v23  ;;  %v1103_v15 = vpop.trf.xlu0 }
 0x2a7   : > { %v1116_v16 = vpack.c.bf16 %v1103_v15, %v1102_v14 }
 0x2aa   : > { %v4040_v17 = vpop.trf.xlu0 }
 0x2ae   : > { %v1105_v18 = vpop.trf.xlu0 }
 0x2af   : > { %v1117_v21 = vpack.c.bf16 %v1105_v18, %v4040_v17 }
 0x2b2   : > { %v1106_v22 = vpop.trf.xlu0 }
 0x2b6   : > { %v1107_v24 = vpop.trf.xlu0 }
 0x2b7   : > { %v1118_v25 = vpack.c.bf16 %v1107_v24, %v1106_v22 }
 0x2b9   : > { %2828 = vmatpush3.bf16.msra.mxu0 %v1118_v25 }
 0x2ba   : > { %v1108_v26 = vpop.trf.xlu0  ;;  %2829 = vmatprep.subr.bf16.mxu0 %v3484_v23 }
 0x2be   : > { %v1109_v27 = vpop.trf.xlu0 }
 0x2bf   : > { %v1119_v28 = vpack.c.bf16 %v1109_v27, %v1108_v26 }
 0x2c1   : > { %2830 = vmatpush3.bf16.msra.mxu0 %v1119_v28 }
 0x2c2   : > { %2841 = vmatprep.subr.bf16.mxu0 %v3484_v23  ;;  %v1110_v42 = vpop.trf.xlu0 }
 0x2c6   : > { %v1111_v43 = vpop.trf.xlu0 }
 0x2c7   : > { %v1120_v50 = vpack.c.bf16 %v1111_v43, %v1110_v42 }
 0x2ca   : > { %v1112_v44 = vpop.trf.xlu0 }
 0x2ce   : > { %v1113_v46 = vpop.trf.xlu0 }
 0x377   : > { %v1204_v5 = vpop.f32.mrb[4].mxu1 }
 0x378   : > { %v1211_v7 = vsel %vm4026_vm2, %v1204_v5, -1e+30  ;;  %v2805_v8 = vpop.f32.mrb[5].mxu1 }
 0x379   : > { %v1207_v9 = vpop.f32.mrb[6].mxu1  ;;  %v1214_v10 = vsel %vm1213_vm3, %v1211_v7, -inf }
 0x37a   : > { %v1212_v11 = vsel %vm4030_vm4, %v1207_v9, -1e+30  ;;  %1215 = vmax.xlane.f32.xlu1 %v1214_v10  ;;  %v2806_v12 = vpop.f32.mrb[7].mxu1 }
 0x37b   : > { %v1217_v13 = vsel %vm1213_vm3, %v1212_v11, -inf }
 0x37e   : > { %1218 = vmax.xlane.f32.xlu1 %v1217_v13 }
 0x407   : > { %v1216_v29 = vpop.xlane.xlu1 %1215 }
 0x408   : > { %v1220_v30 = vsub.f32 %v1211_v7, %v1216_v29 }
 0x40a   : > { %v1222_v33 = vmul.f32 1.442695, %v1220_v30 }
 0x40b   : > { %v1219_v35 = vpop.xlane.xlu1 %1218 }
 0x40c   : > { %3104 = vpow2.f32 %v1222_v33  ;;  %v1221_v36 = vsub.f32 %v1212_v11, %v1219_v35 }
 0x40e   : > { %v1224_v37 = vmul.f32 1.442695, %v1221_v36 }
 0x410   : > { %3106 = vpow2.f32 %v1224_v37 }
 0x416   : > { %v3105_v38 = vpop.eup %3104 }
 0x417   : > { %v1226_v39 = vsel %vm1213_vm3, %v3105_v38, 0.0 }
 0x418   : > { %1227 = vadd.xlane.f32.xlu0 %v1226_v39 }
 0x41a   : > { %v3107_v40 = vpop.eup %3106 }
 0x41b   : > { %v1229_v41 = vsel %vm1213_vm3, %v3107_v40, 0.0 }
 0x41c   : > { %1230 = vadd.xlane.f32.xlu1 %v1229_v41 }
 0x42d   : > { %1282 = vrot.lane.b32.xlu1 %v4004_v45, %s3486_s3 }
 0x431   : > { %1401 = vrot.lane.b32.xlu1 %v4004_v45, %s3487_s4 }
 0x435   : > { %1519 = vrot.lane.b32.xlu1 %v4004_v45, %s3488_s15  ;;  %v1121_v45 = vpack.c.bf16 %v1113_v46, %v1112_v44 }
 0x4a5   : > { %v1228_v47 = vpop.xlane.xlu0 %1227 }
 0x4a6   : > { %3108 = vrcp.f32 %v1228_v47 }
 0x4a9   : > { %v1231_v48 = vpop.xlane.xlu1 %1230 }
 0x4aa   : > { %3110 = vrcp.f32 %v1231_v48 }
 0x4ad   : > { %v1283_v49 = vpop.permute.xlu1 %1282 }
 0x4b0   : > { %v3109_v52 = vpop.eup %3108 }
 0x4b1   : > { %v1402_v51 = vpop.permute.xlu1 %1401  ;;  %v1233_v54 = vmul.f32 %v3109_v52, %v3105_v38 }
 0x4b2   : > { %2832 = vmatmul.mubr.msk.bf16.vlgmr.msra.gmra.mrb[4].mxu0 %vm1166_vm1, %v1402_v51 }
 0x4b3   : > { %2842 = vmatpush3.bf16.msra.mxu0 %v1120_v50  ;;  %2845 = vmatprep.mubr.msk.bf16.mxu0 %vm3485_vm0, %v3484_v23 }
 0x4b4   : > { %v3111_v53 = vpop.eup %3110  ;;  %2843 = vmatprep.subr.bf16.mxu0 %v3484_v23 }
 0x4b5   : > { %v1235_v55 = vmul.f32 %v3111_v53, %v3107_v40  ;;  %v1520_v57 = vpop.permute.xlu1 %1519 }
 0x4b7   : > { %2844 = vmatpush3.bf16.msra.mxu0 %v1121_v45  ;;  %v1236_v56 = vpack.c.bf16 %v1235_v55, %v1233_v54 }
 0x4b8   : > { %2855 = vmatprep.subr.bf16.mxu0 %v3484_v23 }
 0x4b9   : > { %2810 = vmatmul.mubr.msk.bf16.vlgmr.msra.gmra.mrb[8].mxu1 %vm1213_vm3, %v1236_v56 }
 0x4ba   : > { %2814 = vmatpush3.bf16.msra.mxu1 %v1116_v16  ;;  %2846 = vmatmul.mubr.msk.bf16.vlgmr.msra.gmra.mrb[8].mxu0 %vm1166_vm1, %v1520_v57 }
 0x4bb   : > { %2815 = vmatprep.subr.bf16.mxu1 %v3484_v23  ;;  %2817 = vmatprep.mubr.msk.bf16.mxu1 %vm3485_vm0, %v3484_v23 }
 0x4bc   : > { %2871 = vmatprep.mubr.msk.bf16.mxu0 %vm3485_vm0, %v3484_v23 }
 0x4be   : > { %2816 = vmatpush3.bf16.msra.mxu1 %v1117_v21 }
 0x4bf   : > { %2821 = vmatprep.subr.bf16.mxu1 %v3484_v23 }
 0x4c1   : > { %2818 = vmatmul.mubr.msk.bf16.vlgmr.msra.gmra.mrb[12].mxu1 %vm1166_vm1, %v1283_v49 }
 0x4c2   : > { %2823 = vmatprep.mubr.msk.bf16.mxu1 %vm3485_vm0, %v3484_v23 }
 0x585   : > { %v1440_v58 = vpop.f32.mrb[4].mxu0 }
 0x586   : > { %v2833_v59 = vpop.f32.mrb[5].mxu0  ;;  %v1447_v18 = vsel %vm4026_vm2, %v1440_v58, -1e+30 }
 0x587   : > { %v1443_v60 = vpop.f32.mrb[6].mxu0  ;;  %v1449_v21 = vsel %vm1213_vm3, %v1447_v18, -inf }
 0x588   : > { %v2834_v62 = vpop.f32.mrb[7].mxu0  ;;  %v1448_v22 = vsel %vm4030_vm4, %v1443_v60, -1e+30 }
 0x589   : > { %v1452_v24 = vsel %vm1213_vm3, %v1448_v22, -inf }
 0x58c   : > { %v4069_v63 = vpop.f32.mrb[8].mxu1 }
 0x58d   : > { %v2811_v0 = vpop.f32.mrb[9].mxu1  ;;  %v1558_v1 = vpop.f32.mrb[8].mxu0 }
 0x58e   : > { %v4071_v2 = vpop.f32.mrb[10].mxu1  ;;  %v2847_v5 = vpop.f32.mrb[9].mxu0  ;;  %v1565_v25 = vsel %vm4026_vm2, %v1558_v1, -1e+30 }
 0x58f   : > { %v2812_v7 = vpop.f32.mrb[11].mxu1  ;;  %v1561_v8 = vpop.f32.mrb[10].mxu0  ;;  %v1567_v26 = vsel %vm1213_vm3, %v1565_v25, -inf }
 0x590   : > { %v2848_v9 = vpop.f32.mrb[11].mxu0  ;;  %v1566_v27 = vsel %vm4030_vm4, %v1561_v8, -1e+30 }
 0x591   : > { %v1570_v28 = vsel %vm1213_vm3, %v1566_v27, -inf }
 0x594   : > { %v1321_v10 = vpop.f32.mrb[12].mxu1 }
 0x595   : > { %v1328_v11 = vsel %vm4026_vm2, %v1321_v10, -1e+30  ;;  %v2819_v12 = vpop.f32.mrb[13].mxu1 }
 0x596   : > { %v1324_v13 = vpop.f32.mrb[14].mxu1  ;;  %v1330_v14 = vsel %vm1213_vm3, %v1328_v11, -inf }
 0x597   : > { %v1329_v15 = vsel %vm4030_vm4, %v1324_v13, -1e+30  ;;  %1331 = vmax.xlane.f32.xlu1 %v1330_v14  ;;  %v2820_v16 = vpop.f32.mrb[15].mxu1 }
 0x598   : > { %v1333_v17 = vsel %vm1213_vm3, %v1329_v15, -inf }
 0x59b   : > { %1334 = vmax.xlane.f32.xlu1 %v1333_v17 }
 0x59f   : > { %1450 = vmax.xlane.f32.xlu1 %v1449_v21 }
 0x5a3   : > { %1453 = vmax.xlane.f32.xlu1 %v1452_v24 }
 0x5a7   : > { %1568 = vmax.xlane.f32.xlu1 %v1567_v26 }
 0x5ab   : > { %1571 = vmax.xlane.f32.xlu1 %v1570_v28  ;;  %v3056_v28 = vld [vmem:[%s3898_s18] sm:$0xff]  }
 0x5ac   : > { %2856 = vmatpush3.bf16.msra.mxu0 %v3056_v28  ;;  %v3079_v28 = vld [vmem:[%s3900_s9 + $0x50] ss:$8 sps:$4 sm:$0xff]  }
 0x5ad   : > { %2857 = vmatprep.subr.bf16.mxu0 %v3484_v23 }
 0x624   : > { %v1332_v29 = vpop.xlane.xlu1 %1331 }
 0x625   : > { %v1336_v41 = vsub.f32 %v1328_v11, %v1332_v29  ;;  %v3057_v29 = vld [vmem:[%s3898_s18 + $0x8] sm:$0xff]  }
 0x626   : > { %2858 = vmatpush3.bf16.msra.mxu0 %v3057_v29  ;;  %v3084_v29 = vld [vmem:[%s3900_s9 + $0x64] ss:$8 sps:$4 sm:$0xff]  }
 0x627   : > { %v1338_v46 = vmul.f32 1.442695, %v1336_v41  ;;  %2859 = vmatprep.subr.bf16.mxu0 %v3484_v23 }
 0x628   : > { %v1335_v30 = vpop.xlane.xlu1 %1334 }
 0x629   : > { %v1337_v47 = vsub.f32 %v1329_v15, %v1335_v30  ;;  %v3058_v30 = vld [vmem:[%s3898_s18 + $0x10] sm:$0xff]  }
 0x62a   : > { %2860 = vmatpush3.bf16.msra.mxu0 %v3058_v30  ;;  %v3082_v30 = vld [vmem:[%s3900_s9 + $0x60] ss:$8 sps:$4 sm:$0xff]  }
 0x62b   : > { %v1340_v51 = vmul.f32 1.442695, %v1337_v47  ;;  %2861 = vmatprep.subr.bf16.mxu0 %v3484_v23 }
 0x62c   : > { %v1451_v33 = vpop.xlane.xlu1 %1450 }
 0x62d   : > { %v1455_v35 = vsub.f32 %v1447_v18, %v1451_v33  ;;  %v3059_v33 = vld [vmem:[%s3898_s18 + $0x18] sm:$0xff]  }
 0x62e   : > { %2862 = vmatpush3.bf16.msra.mxu0 %v3059_v33  ;;  %v3087_v33 = vld [vmem:[%s3900_s9 + $0x74] ss:$8 sps:$4 sm:$0xff]  }
 0x62f   : > { %v1457_v36 = vmul.f32 1.442695, %v1455_v35  ;;  %v3060_v35 = vld [vmem:[%s3898_s18 + $0x20] sm:$0xff]   ;;  %2863 = vmatprep.subr.bf16.mxu0 %v3484_v23 }
 0x630   : > { %v1454_v37 = vpop.xlane.xlu1 %1453 }
 0x631   : > { %3112 = vpow2.f32 %v1457_v36  ;;  %v1456_v38 = vsub.f32 %v1448_v22, %v1454_v37  ;;  %v3061_v37 = vld [vmem:[%s3898_s18 + $0x28] sm:$0xff]  }
 0x632   : > { %2864 = vmatpush3.bf16.msra.mxu0 %v3060_v35  ;;  %v3085_v35 = vld [vmem:[%s3900_s9 + $0x70] ss:$8 sps:$4 sm:$0xff]  }
 0x633   : > { %v1459_v3 = vmul.f32 1.442695, %v1456_v38  ;;  %2865 = vmatprep.subr.bf16.mxu0 %v3484_v23 }
 0x634   : > { %v1569_v39 = vpop.xlane.xlu1 %1568 }
 0x635   : > { %3114 = vpow2.f32 %v1459_v3  ;;  %v1573_v40 = vsub.f32 %v1565_v25, %v1569_v39 }
 0x636   : > { %2866 = vmatpush3.bf16.msra.mxu0 %v3061_v37  ;;  %v3090_v37 = vld [vmem:[%s3906_s19 + $0x48] sm:$0xff]  }
 0x637   : > { %v1575_v42 = vmul.f32 1.442695, %v1573_v40  ;;  %v3062_v40 = vld [vmem:[%s3898_s18 + $0x30] sm:$0xff]   ;;  %2867 = vmatprep.subr.bf16.mxu0 %v3484_v23 }
 0x638   : > { %v1572_v6 = vpop.xlane.xlu1 %1571 }
 0x639   : > { %3116 = vpow2.f32 %v1575_v42  ;;  %v1574_v43 = vsub.f32 %v1566_v27, %v1572_v6  ;;  %v3063_v6 = vld [vmem:[%s3898_s18 + $0x38] sm:$0xff]  }
 0x63a   : > { %2868 = vmatpush3.bf16.msra.mxu0 %v3062_v40  ;;  %v3094_v40 = vld [vmem:[%s3906_s19 + $0x58] sm:$0xff]  }
 0x63b   : > { %v3113_v44 = vpop.eup %3112  ;;  %v1577_v48 = vmul.f32 1.442695, %v1574_v43  ;;  %2869 = vmatprep.subr.bf16.mxu0 %v3484_v23 }
 0x63c   : > { %v1461_v49 = vsel %vm1213_vm3, %v3113_v44, 0.0 }
 0x63d   : > { %3118 = vpow2.f32 %v1577_v48  ;;  %1462 = vadd.xlane.f32.xlu1 %v1461_v49 }
 0x63e   : > { %3120 = vpow2.f32 %v1338_v46  ;;  %2870 = vmatpush3.bf16.msra.mxu0 %v3063_v6  ;;  %v3097_v6 = vld [vmem:[%s3906_s19 + $0x20] sm:$0xff]  }
 0x63f   : > { %v3115_v50 = vpop.eup %3114  ;;  %3122 = vpow2.f32 %v1340_v51 }
 0x640   : > { %v1464_v52 = vsel %vm1213_vm3, %v3115_v50, 0.0 }
 0x641   : > { %1465 = vadd.xlane.f32.xlu1 %v1464_v52 }
 0x643   : > { %v3117_v53 = vpop.eup %3116 }
 0x644   : > { %v1579_v45 = vsel %vm1213_vm3, %v3117_v53, 0.0 }
 0x645   : > { %1580 = vadd.xlane.f32.xlu0 %v1579_v45 }
 0x647   : > { %v3119_v54 = vpop.eup %3118 }
 0x648   : > { %v1582_v55 = vsel %vm1213_vm3, %v3119_v54, 0.0  ;;  %v3121_v56 = vpop.eup %3120 }
 0x649   : > { %1583 = vadd.xlane.f32.xlu1 %v1582_v55  ;;  %v1342_v57 = vsel %vm1213_vm3, %v3121_v56, 0.0  ;;  %v3123_v58 = vpop.eup %3122 }
 0x64a   : > { %v1345_v59 = vsel %vm1213_vm3, %v3123_v58, 0.0 }
 0x64d   : > { %1343 = vadd.xlane.f32.xlu1 %v1342_v57 }
 0x651   : > { %1346 = vadd.xlane.f32.xlu1 %v1345_v59 }
 0x65b   : > { %1354 = vrot.lane.b32.xlu0 %v4020_v61, %s3486_s3 }
 0x662   : > { %1472 = vrot.lane.b32.xlu1 %v4020_v61, %s3487_s4 }
 0x666   : > { %1590 = vrot.lane.b32.xlu1 %v4020_v61, %s3488_s15 }
 0x6ca   : > { %v1463_v60 = vpop.xlane.xlu1 %1462 }
 0x6ce   : > { %v1466_v62 = vpop.xlane.xlu1 %1465 }
 0x6d2   : > { %v1581_v0 = vpop.xlane.xlu0 %1580 }
 0x6d6   : > { %v1355_v1 = vpop.permute.xlu0 %1354  ;;  %v1584_v5 = vpop.xlane.xlu1 %1583 }
 0x6d7   : > { %2822 = vmatpush3.bf16.msra.mxu1 %v1355_v1 }
 0x6d8   : > { %2835 = vmatprep.subr.bf16.mxu1 %v3484_v23 }
 0x6da   : > { %v1344_v7 = vpop.xlane.xlu1 %1343 }
 0x6db   : > { %3124 = vrcp.f32 %v1344_v7 }
 0x6de   : > { %v1347_v8 = vpop.xlane.xlu1 %1346 }
 0x6df   : > { %3126 = vrcp.f32 %v1347_v8  ;;  %v2645_v8 = vld [vmem:[%s4380_s1] ss:$0 sm:$0xff] }
 0x6e0   : > { %3128 = vrcp.f32 %v1466_v62 }
 0x6e1   : > { %3130 = vrcp.f32 %v1463_v60 }
 0x6e2   : > { %3132 = vrcp.f32 %v1584_v5  ;;  %v1473_v14 = vpop.permute.xlu1 %1472 }
 0x6e3   : > { %3134 = vrcp.f32 %v1581_v0 }
 0x6e5   : > { %v3125_v9 = vpop.eup %3124 }
 0x6e6   : > { %v1349_v11 = vmul.f32 %v3125_v9, %v3121_v56  ;;  %v1591_v22 = vpop.permute.xlu1 %1590 }
 0x6e9   : > { %v3127_v10 = vpop.eup %3126 }
 0x6ea   : > { %v1351_v12 = vmul.f32 %v3127_v10, %v3123_v58  ;;  %v3129_v13 = vpop.eup %3128 }
 0x6eb   : > { %v3131_v15 = vpop.eup %3130  ;;  %v1470_v16 = vmul.f32 %v3129_v13, %v3115_v50 }
 0x6ec   : > { %v1352_v61 = vpack.c.bf16 %v1351_v12, %v1349_v11  ;;  %v1468_v17 = vmul.f32 %v3131_v15, %v3113_v44  ;;  %v3133_v21 = vpop.eup %3132  ;;  %v3066_v15 = vld [vmem:[%s3900_s9 + $0x4] ss:$8 sps:$4 sm:$0xff]  }
 0x6ed   : > { %v3135_v24 = vpop.eup %3134  ;;  %v1588_v25 = vmul.f32 %v3133_v21, %v3119_v54  ;;  %v3070_v21 = vld [vmem:[%s3900_s9 + $0x20] ss:$8 sps:$4 sm:$0xff]  }
 0x6ee   : > { %2824 = vmatmul.mubr.msk.bf16.vlgmr.msra.gmra.mrb[16].mxu1 %vm1213_vm3, %v1352_v61  ;;  %v1471_v18 = vpack.c.bf16 %v1470_v16, %v1468_v17  ;;  %v1586_v26 = vmul.f32 %v3135_v24, %v3117_v53  ;;  %v3064_v16 = vld [vmem:[%s3900_s9] ss:$8 sps:$4 sm:$0xff]   ;;  %v3067_v17 = vld [vmem:[%s3900_s9 + $0x10] ss:$8 sps:$4 sm:$0xff]  }
 0x6ef   : > { %2836 = vmatpush3.bf16.msra.mxu1 %v1473_v14  ;;  %2837 = vmatprep.mubr.msk.bf16.mxu1 %vm3485_vm0, %v3484_v23  ;;  %v3073_v24 = vld [vmem:[%s3900_s9 + $0x30] ss:$8 sps:$4 sm:$0xff]  }
 0x6f0   : > { %2849 = vmatprep.subr.bf16.mxu1 %v3484_v23  ;;  %v1589_v27 = vpack.c.bf16 %v1588_v25, %v1586_v26  ;;  %v3078_v25 = vld [vmem:[%s3900_s9 + $0x44] ss:$8 sps:$4 sm:$0xff]   ;;  %v3076_v26 = vld [vmem:[%s3900_s9 + $0x40] ss:$8 sps:$4 sm:$0xff]  }
 0x6f6   : > { %2838 = vmatmul.mubr.msk.bf16.vlgmr.msra.gmra.mrb[20].mxu1 %vm1213_vm3, %v1471_v18  ;;  %v3072_v18 = vld [vmem:[%s3900_s9 + $0x24] ss:$8 sps:$4 sm:$0xff]  }
 0x6f7   : > { %2850 = vmatpush3.bf16.msra.mxu1 %v1591_v22  ;;  %2851 = vmatprep.mubr.msk.bf16.mxu1 %vm3485_vm0, %v3484_v23  ;;  %v3075_v22 = vld [vmem:[%s3900_s9 + $0x34] ss:$8 sps:$4 sm:$0xff]  }
 0x6f8   : > { %1939 = vmatprep.subr.bf16.mxu1 %v3066_v15  ;;  %v1847_v15 = vld [vmem:[%s3939_s13] sm:$0x3] }
 0x6fe   : > { %2852 = vmatmul.mubr.msk.bf16.vlgmr.msra.gmra.mrb[24].mxu1 %vm1213_vm3, %v1589_v27  ;;  %v3081_v27 = vld [vmem:[%s3900_s9 + $0x54] ss:$8 sps:$4 sm:$0xff]  }
 0x6ff   : > { %1971 = vmatprep.mubr.bf16.mxu1 %v3483_v4  ;;  %1940 = vmatpush1.bf16.msra.mxu1 %v3064_v16  ;;  %v1852_v16 = vrot.slane %v1847_v15, %v856_v34 }
 0x7c1   : > { %v1394_v4 = vpop.f32.mrb[16].mxu1 }
 0x7c2   : > { %v2825_v36 = vpop.f32.mrb[17].mxu1 }
 0x7c3   : > { %v1397_v38 = vpop.f32.mrb[18].mxu1  ;;  %v3089_v36 = vld [vmem:[%s3906_s19] sm:$0xff]  }
 0x7c4   : > { %v3009_v3 = vpack.i.bf16 %v1397_v38, %v1394_v4  ;;  %v2826_v39 = vpop.f32.mrb[19].mxu1  ;;  %v3088_v4 = vld [vmem:[%s3906_s19 + $0x40] sm:$0xff]   ;;  %v3091_v38 = vld [vmem:[%s3906_s19 + $0x8] sm:$0xff]  }
 0x7c5   : > { %2748 = vmatprep.subr.bf16.mxu0 %v3088_v4  ;;  %v3093_v39 = vld [vmem:[%s3906_s19 + $0x10] sm:$0xff]  }
 0x7c6   : > { %3010 = vrot.lane.b32.xlu1 %v3009_v3, %s3488_s15  ;;  %v3092_v3 = vld [vmem:[%s3906_s19 + $0x50] sm:$0xff]  }
 0x7c9   : > { %v1512_v41 = vpop.f32.mrb[20].mxu1 }
 0x7ca   : > { %v2839_v42 = vpop.f32.mrb[21].mxu1 }
 0x7cb   : > { %v1515_v43 = vpop.f32.mrb[22].mxu1  ;;  %v3096_v42 = vld [vmem:[%s3906_s19 + $0x60] sm:$0xff]  }
 0x7cc   : > { %v3014_v44 = vpack.i.bf16 %v1515_v43, %v1512_v41  ;;  %v2840_v46 = vpop.f32.mrb[23].mxu1  ;;  %v3095_v41 = vld [vmem:[%s3906_s19 + $0x18] sm:$0xff]   ;;  %v3098_v43 = vld [vmem:[%s3906_s19 + $0x68] sm:$0xff]  }
 0x7ce   : > { %3015 = vrot.lane.b32.xlu0 %v3014_v44, %s3487_s4 }
 0x7d1   : > { %v1630_v47 = vpop.f32.mrb[24].mxu1 }
 0x7d2   : > { %v2853_v48 = vpop.f32.mrb[25].mxu1 }
 0x7d3   : > { %v1633_v49 = vpop.f32.mrb[26].mxu1 }
 0x7d4   : > { %v3019_v50 = vpack.i.bf16 %v1633_v49, %v1630_v47  ;;  %v2854_v51 = vpop.f32.mrb[27].mxu1 }
 0x7d6   : > { %3020 = vrot.lane.b32.xlu1 %v3019_v50, %s3486_s3 }
 0x838   : > { %v3011_v52 = vpop.permute.xlu1 %3010 }
 0x839   : > { %v3013_v45 = vunpack.i.h.bf16 %v3011_v52  ;;  %v3012_v54 = vunpack.i.l.bf16 %v3011_v52 }
 0x83b   : > { %v1662_v57 = vsel %vm1166_vm1, %v4071_v2, %v3013_v45  ;;  %v1661_v58 = vsel %vm1166_vm1, %v4069_v63, %v3012_v54 }
 0x840   : > { %v3016_v53 = vpop.permute.xlu0 %3015 }
 0x841   : > { %v3018_v23 = vunpack.i.h.bf16 %v3016_v53  ;;  %v3017_v55 = vunpack.i.l.bf16 %v3016_v53 }
 0x843   : > { %v1665_v62 = vsel %vm1663_vm5, %v1662_v57, %v3018_v23  ;;  %v1664_v0 = vsel %vm1663_vm5, %v1661_v58, %v3017_v55 }
 0x848   : > { %v3021_v56 = vpop.permute.xlu1 %3020 }
 0x849   : > { %v3023_v59 = vunpack.i.h.bf16 %v3021_v56  ;;  %v3022_v60 = vunpack.i.l.bf16 %v3021_v56 }
 0x84b   : > { %v1668_v1 = vsel %vm1666_vm6, %v1665_v62, %v3023_v59  ;;  %v1667_v5 = vsel %vm1666_vm6, %v1664_v0, %v3022_v60  ;;  %v2654_v0 = vld [vmem:[%s4382_s26] ss:$0 sm:$0xff] }
 0x84c   : > { %v1669_v7 = vpack.c.bf16 %v1668_v1, %v1667_v5 }
 0x84e   : > { %2872 = vmatmul.mubr.bf16.vlgmr.msra.gmra.mrb[12].mxu0 %v1669_v7 }
 0x84f   : > { %2749 = vmatpush3.bf16.msra.mxu0 %v3089_v36 }
 0x850   : > { %2750 = vmatprep.subr.bf16.mxu0 %v3090_v37 }
 0x853   : > { %2751 = vmatpush3.bf16.msra.mxu0 %v3091_v38 }
 0x854   : > { %2752 = vmatprep.subr.bf16.mxu0 %v3092_v3 }
 0x857   : > { %2753 = vmatpush3.bf16.msra.mxu0 %v3093_v39 }
 0x858   : > { %2754 = vmatprep.subr.bf16.mxu0 %v3094_v40 }
 0x85b   : > { %2755 = vmatpush3.bf16.msra.mxu0 %v3095_v41 }
 0x85c   : > { %2756 = vmatprep.subr.bf16.mxu0 %v3096_v42 }
 0x85f   : > { %2757 = vmatpush3.bf16.msra.mxu0 %v3097_v6 }
 0x860   : > { %2758 = vmatprep.subr.bf16.mxu0 %v3098_v43 }
 0x921   : > { %v1775_v9 = vpop.f32.mrb[12].mxu0 }
 0x922   : > { %v1776_v2 = vadd.f32 %v2645_v8, %v1775_v9  ;;  %v2873_v10 = vpop.f32.mrb[13].mxu0  ;;  %v2655_v9 = vld [vmem:[%s801_s10] ss:$0 sm:$0xff] }
 0x923   : > { %v1778_v63 = vpop.f32.mrb[14].mxu0 }
 0x924   : > { %v4141_v11 = vadd.f32 %v1776_v2, %v3972_v19  ;;  %v1779_v12 = vadd.f32 %v2645_v8, %v1778_v63  ;;  %v2874_v61 = vpop.f32.mrb[15].mxu0 }
 0x925   : > { %v3100_v61 = vld [vmem:[%s3906_s19 + $0x70] sm:$0xff]  }
 0x926   : > { %v4144_v13 = vadd.f32 %v1779_v12, %v3974_v20  ;;  %1786 = vadd.xlane.f32.xlu0 %v4141_v11  ;;  %v1790_v14 = vmul.f32 %v4141_v11, %v4141_v11  ;;  %v3069_v20 = vld [vmem:[%s3900_s9 + $0x14] ss:$8 sps:$4 sm:$0xff]   ;;  %v3099_v12 = vld [vmem:[%s3906_s19 + $0x28] sm:$0xff]  }
 0x927   : > { %1941 = vmatprep.subr.bf16.mxu1 %v3069_v20  ;;  %2759 = vmatpush3.bf16.msra.mxu0 %v3099_v12  ;;  %v1856_v20 = vrot.slane %v1847_v15, %v860_v32  ;;  %v3489_v12 = vmov (!%p2691_p3), 0.0   ;;  %v3149_v15 = vld [vmem:[#allocation13 + $0x28] sm:$0xff] (!%p2691_p3)  }
 0x928   : > { %1788 = vadd.xlane.f32.xlu1 %v4144_v13  ;;  %v1791_v19 = vmul.f32 %v4144_v13, %v4144_v13  ;;  %1942 = vmatpush1.bf16.msra.mxu1 %v3067_v17 }
 0x929   : > { %1943 = vmatprep.subr.bf16.mxu1 %v3072_v18  ;;  %2760 = vmatprep.subr.bf16.mxu0 %v3100_v61  ;;  %v3145_v61 = vld [vmem:[#allocation13 + $0x8] sm:$0xff] (!%p2691_p3)  }
 0x92a   : > { %1792 = vadd.xlane.f32.xlu0 %v1790_v14  ;;  %v3102_v14 = vld [vmem:[%s3906_s19 + $0x78] sm:$0xff]  }
 0x92c   : > { %1944 = vmatpush1.bf16.msra.mxu1 %v3070_v21 }
 0x92d   : > { %1945 = vmatprep.subr.bf16.mxu1 %v3075_v22 }
 0x92e   : > { %1794 = vadd.xlane.f32.xlu0 %v1791_v19  ;;  %v3103_v19 = vld [vmem:[%s3906_s19 + $0x38] sm:$0xff]  }
 0x930   : > { %1946 = vmatpush1.bf16.msra.mxu1 %v3073_v24 }
 0x931   : > { %1947 = vmatprep.subr.bf16.mxu1 %v3078_v25 }
 0x934   : > { %1948 = vmatpush1.bf16.msra.mxu1 %v3076_v26 }
 0x935   : > { %1949 = vmatprep.subr.bf16.mxu1 %v3081_v27 }
 0x938   : > { %1950 = vmatpush1.bf16.msra.mxu1 %v3079_v28 }
 0x939   : > { %1951 = vmatprep.subr.bf16.mxu1 %v3084_v29 }
 0x93c   : > { %1952 = vmatpush1.bf16.msra.mxu1 %v3082_v30 }
 0x93d   : > { %1953 = vmatprep.subr.bf16.mxu1 %v3087_v33 }
 0x940   : > { %1954 = vmatpush1.bf16.msra.mxu1 %v3085_v35 }
 0x9b3   : > { %v1787_v44 = vpop.xlane.xlu0 %1786 }
 0x9b4   : > { %v1796_v46 = vmul.f32 0.0078125, %v1787_v44 }
 0x9b5   : > { %v1789_v47 = vpop.xlane.xlu1 %1788 }
 0x9b6   : > { %v1800_v49 = vmul.f32 %v1796_v46, %v1796_v46  ;;  %v1797_v50 = vmul.f32 0.0078125, %v1789_v47  ;;  %v1806_v59 = vsub.f32 %v4141_v11, %v1796_v46 }
 0x9b7   : > { %v1793_v48 = vpop.xlane.xlu0 %1792 }
 0x9b8   : > { %v1798_v51 = vmul.f32 0.0078125, %v1793_v48  ;;  %v1801_v45 = vmul.f32 %v1797_v50, %v1797_v50  ;;  %v1807_v1 = vsub.f32 %v4144_v13, %v1797_v50  ;;  %v3101_v13 = vld [vmem:[%s3906_s19 + $0x30] sm:$0xff]   ;;  %s4384_s19 = scalar_lea.vmem [#allocation11], %s3887_s28 }
 0x9b9   : > { %2761 = vmatpush3.bf16.msra.mxu0 %v3101_v13  ;;  %v2672_v31 = vld [vmem:[%s4384_s19] ss:$0 sm:$0xff]  ;;  %v3146_v13 = vld [vmem:[#allocation13 + $0x10] sm:$0xff] (!%p2691_p3)  }
 0x9ba   : > { %v1802_v52 = vsub.f32 %v1798_v51, %v1800_v49  ;;  %2762 = vmatprep.subr.bf16.mxu0 %v3102_v14  ;;  %v3147_v14 = vld [vmem:[#allocation13 + $0x18] sm:$0xff] (!%p2691_p3)  }
 0x9bb   : > { %v1795_v53 = vpop.xlane.xlu0 %1794 }
 0x9bc   : > { %v1804_v54 = vmax.f32 %v1802_v52, 0.0  ;;  %v1799_v23 = vmul.f32 0.0078125, %v1795_v53 }
 0x9bd   : > { %2763 = vmatpush3.bf16.msra.mxu0 %v3103_v19  ;;  %v3148_v19 = vld [vmem:[#allocation13 + $0x20] sm:$0xff] (!%p2691_p3)  }
 0x9be   : > { %v1808_v55 = vadd.f32 1e-05, %v1804_v54  ;;  %v1803_v56 = vsub.f32 %v1799_v23, %v1801_v45  ;;  %2875 = vmatprep.subr.bf16.mxu0 (!%p2691_p3), %v3489_v12 }
 0x9c0   : > { %3136 = vrsqrt.f32 %v1808_v55  ;;  %v1805_v57 = vmax.f32 %v1803_v56, 0.0 }
 0x9c2   : > { %v1809_v58 = vadd.f32 1e-05, %v1805_v57 }
 0x9c4   : > { %3138 = vrsqrt.f32 %v1809_v58 }
 0x9ca   : > { %v3137_v60 = vpop.eup %3136 }
 0x9cb   : > { %v1812_v62 = vmul.f32 %v3137_v60, %v1806_v59 }
 0x9cd   : > { %v1820_v8 = vmul.f32 %v2654_v0, %v1812_v62  ;;  %v2689_v62 = vld [vmem:[%s804_s7] ss:$0 sm:$0xff] }
 0x9ce   : > { %v3139_v5 = vpop.eup %3138 }
 0x9cf   : > { %v1813_v7 = vmul.f32 %v3139_v5, %v1807_v1  ;;  %v1828_v10 = vadd.f32 %v2655_v9, %v1820_v8 }
 0x9d1   : > { %v1821_v2 = vmul.f32 %v2654_v0, %v1813_v7  ;;  %v2690_v7 = vld [vmem:[%s807_s5] ss:$0 sm:$0xff]  ;;  %s4387_s5 = sld [smem:[#allocation41_spill]] (!%p2691_p3) }
 0x9d3   : > { %v1829_v63 = vadd.f32 %v2655_v9, %v1821_v2 }
 0x9d5   : > { %v1830_v11 = vpack.c.bf16 %v1829_v63, %v1828_v10 }
 0x9d7   : > { %1972 = vmatmul.mubr.bf16.vlgmr.msra.gmra.mrb[28].mxu1 %v1830_v11  ;;  %v3144_v11 = vld [vmem:[#allocation13] sm:$0xff] (!%p2691_p3)  }
 0xaaa   : > { %v1973_v17 = vpop.f32.mrb[28].mxu1 }
 0xaab   : > { %v1974_v18 = vadd.f32 %v1973_v17, %v1852_v16  ;;  %v1975_v21 = vpop.f32.mrb[29].mxu1 }
 0xaac   : > { %v1976_v22 = vadd.f32 %v1975_v21, %v1856_v20  ;;  %v1977_v24 = vpop.f32.mrb[30].mxu1 }
 0xaad   : > { %v1978_v25 = vadd.f32 %v1977_v24, %v1852_v16  ;;  %v1979_v26 = vpop.f32.mrb[31].mxu1  ;;  %v1982_v28 = vmax.f32 %v1974_v18, 0.0  ;;  %v3150_v16 = vld [vmem:[#allocation13 + $0x30] sm:$0xff] (!%p2691_p3)   ;;  %v2692_v18 = vld [vmem:[%s4387_s5] ss:$0 sm:$0xff] (!%p2691_p3) }
 0xaae   : > { %v1980_v27 = vadd.f32 %v1979_v26, %v1856_v20  ;;  %v1983_v30 = vmax.f32 %v1976_v22, 0.0  ;;  %v3151_v20 = vld [vmem:[#allocation13 + $0x38] sm:$0xff] (!%p2691_p3)  }
 0xaaf   : > { %v1984_v29 = vmax.f32 %v1978_v25, 0.0 }
 0xab0   : > { %v1985_v33 = vmax.f32 %v1980_v27, 0.0 }
 0xab1   : > { %v1986_v35 = vpack.c.bf16 %v1984_v29, %v1982_v28 }
 0xab2   : > { %v1987_v4 = vpack.c.bf16 %v1985_v33, %v1983_v30 }
 0xab4   : > { %2155 = vmatprep.mubr.bf16.mxu0 %v1987_v4 }
 0xab5   : > { %2156 = vmatmul.mubr.bf16.vlgmr.msra.gmra.mrb[16].mxu0 %v1986_v35 }
 0xab6   : > { %2876 = vmatpush3.bf16.msra.mxu0 (!%p2691_p3), %v3144_v11  ;;  %2891 = vmatprep.mubr.msk.bf16.mxu0 (!%p2691_p3), %vm3490_vm7, %v3489_v12 }
 0xab7   : > { %2877 = vmatprep.subr.bf16.mxu0 (!%p2691_p3), %v3489_v12 }
 0xaba   : > { %2878 = vmatpush3.bf16.msra.mxu0 (!%p2691_p3), %v3145_v61 }
 0xabb   : > { %2879 = vmatprep.subr.bf16.mxu0 (!%p2691_p3), %v3489_v12 }
 0xabe   : > { %2880 = vmatpush3.bf16.msra.mxu0 (!%p2691_p3), %v3146_v13 }
 0xabf   : > { %2881 = vmatprep.subr.bf16.mxu0 (!%p2691_p3), %v3489_v12 }
 0xac2   : > { %2882 = vmatpush3.bf16.msra.mxu0 (!%p2691_p3), %v3147_v14 }
 0xac3   : > { %2883 = vmatprep.subr.bf16.mxu0 (!%p2691_p3), %v3489_v12 }
 0xac6   : > { %2884 = vmatpush3.bf16.msra.mxu0 (!%p2691_p3), %v3148_v19 }
 0xac7   : > { %2885 = vmatprep.subr.bf16.mxu0 (!%p2691_p3), %v3489_v12 }
 0xaca   : > { %2886 = vmatpush3.bf16.msra.mxu0 (!%p2691_p3), %v3149_v15 }
 0xacb   : > { %2887 = vmatprep.subr.bf16.mxu0 (!%p2691_p3), %v3489_v12 }
 0xace   : > { %2888 = vmatpush3.bf16.msra.mxu0 (!%p2691_p3), %v3150_v16 }
 0xacf   : > { %2889 = vmatprep.subr.bf16.mxu0 (!%p2691_p3), %v3489_v12 }
 0xad2   : > { %2890 = vmatpush3.bf16.msra.mxu0 (!%p2691_p3), %v3151_v20 }
 0xb88   : > { %v2764_v34 = vpop.f32.mrb[16].mxu0 }
 0xb89   : > { %v2765_v32 = vpop.f32.mrb[17].mxu0 }
 0xb8a   : > { %v2766_v36 = vadd.f32 %v2765_v32, %v2764_v34  ;;  %v2767_v37 = vpop.f32.mrb[18].mxu0 }
 0xb8b   : > { %v2768_v38 = vpop.f32.mrb[19].mxu0 }
 0xb8c   : > { %v2158_v3 = vadd.f32 %v2766_v36, %v2672_v31  ;;  %v2769_v39 = vadd.f32 %v2768_v38, %v2767_v37 }
 0xb8e   : > { %v2161_v40 = vadd.f32 %v2769_v39, %v2672_v31  ;;  %v2164_v41 = vadd.f32 %v2158_v3, %v1828_v10 }
 0xb90   : > { %2168 = vadd.xlane.f32.xlu0 %v2164_v41  ;;  %v2165_v42 = vadd.f32 %v2161_v40, %v1829_v63  ;;  %v2172_v6 = vmul.f32 %v2164_v41, %v2164_v41 }
 0xb92   : > { %2170 = vadd.xlane.f32.xlu1 %v2165_v42  ;;  %v2173_v43 = vmul.f32 %v2165_v42, %v2165_v42 }
 0xb94   : > { %2174 = vadd.xlane.f32.xlu0 %v2172_v6 }
 0xb96   : > { %2176 = vadd.xlane.f32.xlu1 %v2173_v43 }
 0xc1d   : > { %v2169_v44 = vpop.xlane.xlu0 %2168 }
 0xc1e   : > { %v2178_v46 = vmul.f32 0.0078125, %v2169_v44 }
 0xc1f   : > { %v2171_v47 = vpop.xlane.xlu1 %2170 }
 0xc20   : > { %v2179_v48 = vmul.f32 0.0078125, %v2171_v47  ;;  %v2182_v50 = vmul.f32 %v2178_v46, %v2178_v46  ;;  %v2188_v59 = vsub.f32 %v2164_v41, %v2178_v46 }
 0xc21   : > { %v2175_v49 = vpop.xlane.xlu0 %2174 }
 0xc22   : > { %v2180_v51 = vmul.f32 0.0078125, %v2175_v49  ;;  %v2183_v53 = vmul.f32 %v2179_v48, %v2179_v48  ;;  %v2189_v0 = vsub.f32 %v2165_v42, %v2179_v48 }
 0xc23   : > { %v2177_v52 = vpop.xlane.xlu1 %2176 }
 0xc24   : > { %v2184_v45 = vsub.f32 %v2180_v51, %v2182_v50  ;;  %v2181_v54 = vmul.f32 0.0078125, %v2177_v52 }
 0xc26   : > { %v2186_v23 = vmax.f32 %v2184_v45, 0.0  ;;  %v2185_v55 = vsub.f32 %v2181_v54, %v2183_v53 }
 0xc28   : > { %v2190_v56 = vadd.f32 1e-05, %v2186_v23  ;;  %v2187_v57 = vmax.f32 %v2185_v55, 0.0 }
 0xc2a   : > { %3140 = vrsqrt.f32 %v2190_v56  ;;  %v2191_v58 = vadd.f32 1e-05, %v2187_v57 }
 0xc2c   : > { %3142 = vrsqrt.f32 %v2191_v58 }
 0xc34   : > { %v3141_v60 = vpop.eup %3140 }
 0xc35   : > { %v2194_v1 = vmul.f32 %v3141_v60, %v2188_v59 }
 0xc36   : > { %v3143_v5 = vpop.eup %3142 }
 0xc37   : > { %v2202_v8 = vmul.f32 %v2689_v62, %v2194_v1  ;;  %v2195_v9 = vmul.f32 %v3143_v5, %v2189_v0  ;;  %2217 = sbr.rel (%p2691_p3) target bundleno = 3352 (0xd18), region = 116 }
 0xc39   : > { %v2210_v2 = vadd.f32 %v2690_v7, %v2202_v8  ;;  %v2203_v10 = vmul.f32 %v2689_v62, %v2195_v9 }
 0xc3b   : > { %2212 = vst [vmem:[#allocation15] sm:$0xff] %v2210_v2  ;;  %v2211_v63 = vadd.f32 %v2690_v7, %v2203_v10 }
 0xc3d   : > { %2213 = vst [vmem:[#allocation15 + $0x8] sm:$0xff] %v2211_v63  ;;  %v2218_v17 = vpack.c.bf16 (!%p2691_p3), %v2211_v63, %v2210_v2 }
 0xc3f   : > { %2892 = vmatmul.mubr.bf16.vlgmr.msra.gmra.mrb[0].mxu0 %v2218_v17 }
 0xd12   : > { %v2324_v21 = vpop.f32.mrb[0].mxu0 }
 0xd13   : > { %v2325_v22 = vadd.f32 %v2692_v18, %v2324_v21  ;;  %v2893_v24 = vpop.f32.mrb[1].mxu0 }
 0xd14   : > { %v2327_v25 = vpop.f32.mrb[2].mxu0 }
 0xd15   : > { %2331 = vst [vmem:[#allocation14] sm:$0xff] %v2325_v22  ;;  %v2328_v26 = vadd.f32 %v2692_v18, %v2327_v25  ;;  %v2894_v27 = vpop.f32.mrb[3].mxu0 }
 0xd17   : > { %2332 = vst [vmem:[#allocation14 + $0x8] sm:$0xff] %v2328_v26 }
 0xd18 PF: > { %p2953_p12 = scmp.eq.s32.totalorder %s3599_s25, 1  ;;  %s3491_s27 = smov [#allocation14]  }
 0xd19   : > { %s2339_s21 = sshll.u32 %s3491_s27, 4  ;;  %s2340_s21 = int_to_ptr.vmem [resolvable:$true] %s2339_s21 }
 0xd1a   : > { %s3358_s0 = scalar_lea.vmem %s2340_s21, 256  ;;  %p3365_p7 = scmp.lt.s32.totalorder %s2340_s21, %s2340_s21 }
 0xd1b   : > { %p3359_p2 = scmp.ne.s32.totalorder %s2340_s21, %s3358_s0  ;;  %p3366_p6 = scmp.lt.s32.totalorder %s3358_s0, %s3358_s0 }
 0xd1d   : > { %p3360_p1 = pnand %p3359_p2, %p2953_p12  ;;  %p3367_p4 = por %p3366_p6, %p3365_p7 }
 0xd1f   : > { %p3361_p0 = pneg %p3360_p1 }
 0xd21   : > { %p3368_p10 = pnand %p3367_p4, %p3361_p0 }
 0xd23   : > { %3371 = shalt.err (!%p3368_p10)
}
 0xd24   : > { %s4388_s4 = sld [smem:[#allocation42_spill]] }
 0xd2a   : > { %s3372_s15 = scalar_lea.hbm %s4388_s4, 256 }
 0xd2b   : > { %p3373_p5 = scmp.ne.s32.totalorder %s4388_s4, %s3372_s15  ;;  %p3378_p9 = scmp.lt.u32.totalorder %s3372_s15, %s4388_s4 }
 0xd2d   : > { %p3374_p8 = pnand %p3373_p5, %p2953_p12 }
 0xd2f   : > { %p3375_p11 = pneg %p3374_p8 }
 0xd31   : > { %p3380_p13 = pnand %p3378_p9, %p3375_p11 }
 0xd33   : > { %3383 = shalt.err (!%p3380_p13)
}
 0xd34   : > { %s3492_s9 = smov 128   ;;  %s3493_s11 = smov 8  }
 0xd35   : > { %2918 = dma.vmem_to_hbm [thread:$0]  (%p2953_p12), %s2340_s21, 256, %s4388_s4, [#allocation4], %s3492_s9, %s3492_s9, %s3493_s11  }
 0xd36   : > { %s3494_s23 = smov [#allocation15]  }
 0xd37   : > { %s2352_s29 = sshll.u32 %s3494_s23, 4  ;;  %s2353_s29 = int_to_ptr.vmem [resolvable:$true] %s2352_s29 }
 0xd38   : > { %s3384_s17 = scalar_lea.vmem %s2353_s29, 256  ;;  %p3391_p0 = scmp.lt.s32.totalorder %s2353_s29, %s2353_s29 }
 0xd39   : > { %p3385_p3 = scmp.ne.s32.totalorder %s2353_s29, %s3384_s17  ;;  %p3392_p7 = scmp.lt.s32.totalorder %s3384_s17, %s3384_s17 }
 0xd3b   : > { %p3386_p2 = pnand %p3385_p3, %p2953_p12  ;;  %p3393_p6 = por %p3392_p7, %p3391_p0 }
 0xd3d   : > { %p3387_p1 = pneg %p3386_p2 }
 0xd3f   : > { %p3394_p4 = pnand %p3393_p6, %p3387_p1 }
 0xd41   : > { %3397 = shalt.err (!%p3394_p4)
}
 0xd42   : > { %s4389_s14 = sld [smem:[#allocation43_spill]] }
 0xd48   : > { %s3398_s2 = scalar_lea.hbm %s4389_s14, 256 }
 0xd49   : > { %p3399_p10 = scmp.ne.s32.totalorder %s4389_s14, %s3398_s2  ;;  %p3404_p11 = scmp.lt.u32.totalorder %s3398_s2, %s4389_s14 }
 0xd4b   : > { %p3400_p5 = pnand %p3399_p10, %p2953_p12 }
 0xd4d   : > { %p3401_p8 = pneg %p3400_p5 }
 0xd4f   : > { %p3406_p9 = pnand %p3404_p11, %p3401_p8 }
 0xd51   : > { %3409 = shalt.err (!%p3406_p9)
}
 0xd52   : > { %2920 = dma.vmem_to_hbm [thread:$0]  (%p2953_p12), %s2353_s29, 256, %s4389_s14, [#allocation16], %s3492_s9, %s3492_s9, %s3493_s11  }
 0xd53   : > { %3447 = dma.done.wait (%p2953_p12), [#allocation4], 256  }
 0xd54   : > { %3449 = vsyncadd (%p2953_p12), [#allocation4], 4294967040 }
 0xd55   : > { %3451 = dma.done.wait (%p2953_p12), [#allocation16], 256  }
 0xd56   : > { %3453 = vsyncadd (%p2953_p12), [#allocation16], 4294967040 }
 0xd57 PF: > { %s4390_s24 = sld [smem:[#allocation25_spill]]  ;;  %s4391_s27 = sld [smem:[#allocation24_spill]] }
 0xd58   : > { %s4392_s23 = sld [smem:[#allocation26_spill]]  ;;  %s4393_s21 = smov %s3460_s22 }
 0xd5d   : > { %p36_p13 = scmp.ge.s32.totalorder %s4390_s24, 4   ;;  %s4394_s22 = smov %s4391_s27 }
 0xd5f   :  { %38 = sbr.rel (!%p36_p13) target bundleno = 27 (0x1b), region = 211 }
 0xd66   :  { %2372 = vsyncpa [#allocation3], 1 }
 0xd67   :  { %2374 = vsyncpa [#allocation3 + $0x1], 1 }
 0xd68   :  { %2375 = vsyncpa [#allocation6], 1 }
 0xd69   :  { %2377 = vsyncpa [#allocation6 + $0x1], 1 }
 0xd6a   :  { %2378 = vsyncpa [#allocation9], 1 }
 0xd6b   :  { %2380 = vsyncpa [#allocation9 + $0x1], 1 }
 0xd6c   :  { %2381 = vsyncpa [#allocation12], 1 }
 0xd6d   :  { %2383 = vsyncpa [#allocation12 + $0x1], 1 }
 0xd6e   :  { %2384 = vsyncpa [#allocation4], 1 }
 0xd6f   :  { %2386 = vsyncpa [#allocation4 + $0x1], 1 }
 0xd70   :  { %2387 = vsyncpa [#allocation16], 1 }

</bundles_post_ra>
